<compile_context>
chip_gen: v7x
topology: tpu7x:2x2x1
jax: 0.10.0
libtpu: 0.0.40
codegen_flags: <defaults>
</compile_context>

<pallas_src>
import jax
import jax.numpy as jnp
from jax.experimental import pallas as pl
from jax.experimental.pallas import tpu as pltpu

_LANE = 128   # TPU vreg lane width
_SUBLANE = 8  # TPU vreg sublane count


def _round_up(x, m):
    return ((x + m - 1) // m) * m


def _gru_kernel(x_ref, w_in_ref, b_i_ref, w_hh_ref, b_hn_ref, h_out_ref, gi_ref):
    """Fused input projection + full GRU recurrence, single invocation.

    x_ref    : (T*Bp, Dp)  time-major inputs, batch/lane zero-padded.
    w_in_ref : (Dp, 3Hp)   packed input weights  [W_ir | W_iz | W_in] (padded).
    b_i_ref  : (1, 3Hp)    packed bias = [b_ir+b_hr | b_iz+b_hz | b_in].
    w_hh_ref : (Hp, 3Hp)   packed hidden weights [W_hr | W_hz | W_hn] (padded).
    b_hn_ref : (1, Hp)     n-gate hidden bias (must stay inside r*(...)).
    h_out_ref: (Bp, Hp)    final hidden state.
    gi_ref   : (T*Bp, 3Hp) VMEM scratch for the input-side gate pre-activations.
    """
    TB = x_ref.shape[0]
    Bp, Hp = h_out_ref.shape
    T = TB // Bp

    # ---- Prologue: one MXU pass over all T*Bp rows (does not depend on h). ----
    gi_ref[...] = (
        jnp.dot(x_ref[...], w_in_ref[...], preferred_element_type=jnp.float32)
        + b_i_ref[...]
    )

    # Hidden-side weights resident for the whole recurrence.
    w_hh = w_hh_ref[...]
    b_hn = b_hn_ref[...]

    # ---- Serial recurrence, fully unrolled (T is small & static). ----
    h = jnp.zeros((Bp, Hp), jnp.float32)
    for t in range(T):
        gi_t = gi_ref[pl.ds(t * Bp, Bp), :]                      # (Bp, 3Hp), unmasked vld
        gh = jnp.dot(h, w_hh, preferred_element_type=jnp.float32)  # (Bp, 3Hp)
        r = jax.nn.sigmoid(gi_t[:, 0:Hp] + gh[:, 0:Hp])
        z = jax.nn.sigmoid(gi_t[:, Hp:2 * Hp] + gh[:, Hp:2 * Hp])
        n = jnp.tanh(gi_t[:, 2 * Hp:3 * Hp] + r * (gh[:, 2 * Hp:3 * Hp] + b_hn))
        h = (1.0 - z) * n + z * h

    h_out_ref[...] = h.astype(h_out_ref.dtype)


def _pack_params(params, input_dim):
    """Pack per-gate params into lane-aligned matrices; fold r/z hidden biases."""
    w_ih, w_hh = params["w_ih"], params["w_hh"]          # (3, D, H), (3, H, H)
    b_ih, b_hh = params["b_ih"], params["b_hh"]          # (3, H),   (3, H)
    H = w_hh.shape[-1]
    Hp = _round_up(H, _LANE)                             # lane-aligned hidden
    Dp = _round_up(input_dim, _LANE)                     # lane-aligned GRU input

    pad_cols = lambda m: jnp.pad(m, ((0, 0), (0, Hp - H)))
    pad_vec = lambda v: jnp.pad(v, (0, Hp - H))

    # Packed input weights (D, 3Hp) -> zero-pad contraction dim to Dp.
    w_in = jnp.concatenate([pad_cols(w_ih[g]) for g in range(3)], axis=1)
    w_in = jnp.pad(w_in, ((0, Dp - input_dim), (0, 0)))                  # (Dp, 3Hp)

    # Packed hidden weights (Hp, 3Hp).
    w_hh_p = jnp.concatenate([pad_cols(w_hh[g]) for g in range(3)], axis=1)
    w_hh_p = jnp.pad(w_hh_p, ((0, Hp - H), (0, 0)))                      # (Hp, 3Hp)

    # Fold r/z hidden biases into the input-side bias (off the serial path);
    # the n-gate hidden bias MUST stay inside the r-multiplied term (torch GRU).
    b_i = jnp.concatenate([pad_vec(b_ih[0] + b_hh[0]),
                           pad_vec(b_ih[1] + b_hh[1]),
                           pad_vec(b_ih[2])])[None, :]                   # (1, 3Hp)
    b_hn = pad_vec(b_hh[2])[None, :]                                     # (1, Hp)
    return w_in, w_hh_p, b_i, b_hn, H, Hp, Dp


@jax.jit
def history_encoder_forward(state_history, control_history, params):
    """Pallas implementation of HistoryEncoder.forward -> context vector (B, H).

    state_history:   (B, T, state_dim)    float32
    control_history: (B, T, control_dim)  float32
    params: dict with 'w_ih' (3, D, H), 'w_hh' (3, H, H),
            'b_ih' (3, H), 'b_hh' (3, H)  — gate order (r, z, n), single layer.
    """
    B, T, S = state_history.shape
    C = control_history.shape[-1]
    D = S + C
    w_in, w_hh_p, b_i, b_hn, H, Hp, Dp = _pack_params(params, D)
    Bp = _round_up(max(B, 1), _SUBLANE)     # full sublane tiles in the kernel
    G = 3 * Hp

    # Tiny layout prep (single fused XLA op over a few KB): cat state/control,
    # go time-major, zero-pad batch to Bp and input dim to Dp, flatten to rows.
    # Zero padding is exact: padded input lanes multiply zero weight rows, and
    # padded batch rows are sliced off below.
    x = jnp.concatenate([state_history, control_history], axis=-1).astype(jnp.float32)
    x = jnp.transpose(x, (1, 0, 2))                                     # (T, B, D)
    x = jnp.pad(x, ((0, 0), (0, Bp - B), (0, Dp - D)))                  # (T, Bp, Dp)
    x = x.reshape(T * Bp, Dp)

    vmem = pl.BlockSpec(memory_space=pltpu.MemorySpace.VMEM)
    h_pad = pl.pallas_call(
        _gru_kernel,
        out_shape=jax.ShapeDtypeStruct((Bp, Hp), jnp.float32),
        in_specs=[vmem, vmem, vmem, vmem, vmem],
        out_specs=vmem,
        scratch_shapes=[pltpu.VMEM((T * Bp, G), jnp.float32)],
    )(x, w_in, b_i, w_hh_p, b_hn)

    # Padded hidden lanes provably stay zero (zero weights/bias -> r=z=0.5,
    # n=0 -> h stays 0); padded batch rows are simply dropped here.
    return h_pad[:B, :H]


def init_gru_params(key, input_dim, hidden_dim):
    """PyTorch-style init: U(-1/sqrt(H), 1/sqrt(H)), gate order (r, z, n)."""
    bound = 1.0 / jnp.sqrt(jnp.float32(hidden_dim))
    k1, k2, k3, k4 = jax.random.split(key, 4)
    w_ih = jax.random.uniform(k1, (3, input_dim, hidden_dim), jnp.float32, -bound, bound)
    w_hh = jax.random.uniform(k2, (3, hidden_dim, hidden_dim), jnp.float32, -bound, bound)
    b_ih = jax.random.uniform(k3, (3, hidden_dim), jnp.float32, -bound, bound)
    b_hh = jax.random.uniform(k4, (3, hidden_dim), jnp.float32, -bound, bound)
    return {"w_ih": w_ih, "w_hh": w_hh, "b_ih": b_ih, "b_hh": b_hh}


def _reference_forward(state_history, control_history, params):
    """Pure-JAX GRU reference (matches torch.nn.GRU, single layer, h0 = 0)."""
    x = jnp.concatenate([state_history, control_history], axis=-1)  # (B, T, D)
    w_ih, w_hh, b_ih, b_hh = (params["w_ih"], params["w_hh"],
                              params["b_ih"], params["b_hh"])
    B = x.shape[0]
    H = w_hh.shape[-1]
    h0 = jnp.zeros((B, H), jnp.float32)

    def step(h, x_t):
        gi = [x_t @ w_ih[g] + b_ih[g] for g in range(3)]
        gh = [h @ w_hh[g] + b_hh[g] for g in range(3)]
        r = jax.nn.sigmoid(gi[0] + gh[0])
        z = jax.nn.sigmoid(gi[1] + gh[1])
        n = jnp.tanh(gi[2] + r * gh[2])
        return (1.0 - z) * n + z * h, None

    h_final, _ = jax.lax.scan(step, h0, jnp.transpose(x, (1, 0, 2)))
    return h_final


if __name__ == "__main__":
    # Small shapes consistent with the module: batch=2, seq=8,
    # state_dim=12, control_dim=4 (-> GRU input 16), rnn_hidden_dim=32.
    B, T = 2, 8
    state_dim, control_dim, hidden_dim = 12, 4, 32

    key = jax.random.PRNGKey(0)
    k_s, k_c, k_p = jax.random.split(key, 3)
    state_history = jax.random.normal(k_s, (B, T, state_dim), jnp.float32)
    control_history = jax.random.normal(k_c, (B, T, control_dim), jnp.float32)
    params = init_gru_params(k_p, state_dim + control_dim, hidden_dim)

    ctx = history_encoder_forward(state_history, control_history, params)
    ctx = jax.block_until_ready(ctx)

    ref = _reference_forward(state_history, control_history, params)
    assert ctx.shape == (B, hidden_dim)
    assert jnp.allclose(ctx, ref, rtol=2e-3, atol=2e-3), "mismatch vs JAX reference"

    print("KERNEL_OK")
</pallas_src>

<mosaic_0001>
module attributes {stable_mosaic.version = 11 : i64} {
  func.func @_gru_kernel(%arg0: memref<64x128xf32, #tpu.memory_space<vmem>>, %arg1: memref<128x384xf32, #tpu.memory_space<vmem>>, %arg2: memref<1x384xf32, #tpu.memory_space<vmem>>, %arg3: memref<128x384xf32, #tpu.memory_space<vmem>>, %arg4: memref<1x128xf32, #tpu.memory_space<vmem>>, %arg5: memref<8x128xf32, #tpu.memory_space<vmem>>, %arg6: memref<64x384xf32, #tpu.memory_space<vmem>>) attributes {dimension_semantics = [], scalar_prefetch = 0 : i64, scratch_operands = 1 : i64, tpu.core_type = #tpu.core_type<tc>} {
    %c0 = arith.constant 0 : index
    %c0_0 = arith.constant 0 : index
    %0 = vector.load %arg0[%c0, %c0_0] : memref<64x128xf32, #tpu.memory_space<vmem>>, vector<64x128xf32>
    %c0_1 = arith.constant 0 : index
    %c0_2 = arith.constant 0 : index
    %1 = vector.load %arg1[%c0_1, %c0_2] : memref<128x384xf32, #tpu.memory_space<vmem>>, vector<128x384xf32>
    %cst = arith.constant dense<0.000000e+00> : vector<64x384xf32>
    %2 = tpu.matmul %0, %1, %cst {dimension_numbers = #tpu.dot_dimension_numbers<[1], [0], [0], [1], [0, 0, 1, 1], [], []>} : vector<64x128xf32>, vector<128x384xf32>, vector<64x384xf32> -> vector<64x384xf32>
    %c0_3 = arith.constant 0 : index
    %c0_4 = arith.constant 0 : index
    %3 = vector.load %arg2[%c0_3, %c0_4] : memref<1x384xf32, #tpu.memory_space<vmem>>, vector<1x384xf32>
    %4 = vector.broadcast %3 : vector<1x384xf32> to vector<64x384xf32>
    %5 = arith.addf %2, %4 : vector<64x384xf32>
    %c0_5 = arith.constant 0 : index
    %c0_6 = arith.constant 0 : index
    %6 = vector.load %arg6[%c0_5, %c0_6] : memref<64x384xf32, #tpu.memory_space<vmem>>, vector<64x384xf32>
    tpu.vector_store %arg6[%c0_5, %c0_6], %5 {strides = array<i32>} : memref<64x384xf32, #tpu.memory_space<vmem>>, vector<64x384xf32>,
    %c0_7 = arith.constant 0 : index
    %c0_8 = arith.constant 0 : index
    %7 = vector.load %arg3[%c0_7, %c0_8] : memref<128x384xf32, #tpu.memory_space<vmem>>, vector<128x384xf32>
    %c0_9 = arith.constant 0 : index
    %c0_10 = arith.constant 0 : index
    %8 = vector.load %arg4[%c0_9, %c0_10] : memref<1x128xf32, #tpu.memory_space<vmem>>, vector<1x128xf32>
    %cst_11 = arith.constant 0.000000e+00 : f32
    %9 = vector.broadcast %cst_11 : f32 to vector<8x128xf32>
    %c0_12 = arith.constant 0 : index
    %c0_13 = arith.constant 0 : index
    %10 = vector.load %arg6[%c0_12, %c0_13] : memref<64x384xf32, #tpu.memory_space<vmem>>, vector<8x384xf32>
    %cst_14 = arith.constant dense<0.000000e+00> : vector<8x384xf32>
    %11 = tpu.matmul %9, %7, %cst_14 {dimension_numbers = #tpu.dot_dimension_numbers<[1], [0], [0], [1], [0, 0, 1, 1], [], []>} : vector<8x128xf32>, vector<128x384xf32>, vector<8x384xf32> -> vector<8x384xf32>
    %12 = vector.extract_strided_slice %10 {offsets = [0, 0], sizes = [8, 128], strides = [1, 1]} : vector<8x384xf32> to vector<8x128xf32>
    %13 = vector.extract_strided_slice %11 {offsets = [0, 0], sizes = [8, 128], strides = [1, 1]} : vector<8x384xf32> to vector<8x128xf32>
    %14 = arith.addf %12, %13 : vector<8x128xf32>
    %15 = arith.negf %14 : vector<8x128xf32>
    %16 = math.exp %15 : vector<8x128xf32>
    %cst_15 = arith.constant 1.000000e+00 : f32
    %17 = vector.broadcast %cst_15 : f32 to vector<8x128xf32>
    %18 = arith.addf %17, %16 : vector<8x128xf32>
    %19 = arith.divf %17, %18 : vector<8x128xf32>
    %20 = vector.extract_strided_slice %10 {offsets = [0, 128], sizes = [8, 128], strides = [1, 1]} : vector<8x384xf32> to vector<8x128xf32>
    %21 = vector.extract_strided_slice %11 {offsets = [0, 128], sizes = [8, 128], strides = [1, 1]} : vector<8x384xf32> to vector<8x128xf32>
    %22 = arith.addf %20, %21 : vector<8x128xf32>
    %23 = arith.negf %22 : vector<8x128xf32>
    %24 = math.exp %23 : vector<8x128xf32>
    %cst_16 = arith.constant 1.000000e+00 : f32
    %25 = vector.broadcast %cst_16 : f32 to vector<8x128xf32>
    %26 = arith.addf %25, %24 : vector<8x128xf32>
    %27 = arith.divf %25, %26 : vector<8x128xf32>
    %28 = vector.extract_strided_slice %10 {offsets = [0, 256], sizes = [8, 128], strides = [1, 1]} : vector<8x384xf32> to vector<8x128xf32>
    %29 = vector.extract_strided_slice %11 {offsets = [0, 256], sizes = [8, 128], strides = [1, 1]} : vector<8x384xf32> to vector<8x128xf32>
    %30 = vector.broadcast %8 : vector<1x128xf32> to vector<8x128xf32>
    %31 = arith.addf %29, %30 : vector<8x128xf32>
    %32 = arith.mulf %19, %31 : vector<8x128xf32>
    %33 = arith.addf %28, %32 : vector<8x128xf32>
    %34 = math.tanh %33 : vector<8x128xf32>
    %cst_17 = arith.constant 1.000000e+00 : f32
    %35 = vector.broadcast %cst_17 : f32 to vector<8x128xf32>
    %36 = arith.subf %35, %27 : vector<8x128xf32>
    %37 = arith.mulf %36, %34 : vector<8x128xf32>
    %38 = arith.mulf %27, %9 : vector<8x128xf32>
    %39 = arith.addf %37, %38 : vector<8x128xf32>
    %c8 = arith.constant 8 : index
    %c0_18 = arith.constant 0 : index
    %40 = vector.load %arg6[%c8, %c0_18] : memref<64x384xf32, #tpu.memory_space<vmem>>, vector<8x384xf32>
    %cst_19 = arith.constant dense<0.000000e+00> : vector<8x384xf32>
    %41 = tpu.matmul %39, %7, %cst_19 {dimension_numbers = #tpu.dot_dimension_numbers<[1], [0], [0], [1], [0, 0, 1, 1], [], []>} : vector<8x128xf32>, vector<128x384xf32>, vector<8x384xf32> -> vector<8x384xf32>
    %42 = vector.extract_strided_slice %40 {offsets = [0, 0], sizes = [8, 128], strides = [1, 1]} : vector<8x384xf32> to vector<8x128xf32>
    %43 = vector.extract_strided_slice %41 {offsets = [0, 0], sizes = [8, 128], strides = [1, 1]} : vector<8x384xf32> to vector<8x128xf32>
    %44 = arith.addf %42, %43 : vector<8x128xf32>
    %45 = arith.negf %44 : vector<8x128xf32>
    %46 = math.exp %45 : vector<8x128xf32>
    %cst_20 = arith.constant 1.000000e+00 : f32
    %47 = vector.broadcast %cst_20 : f32 to vector<8x128xf32>
    %48 = arith.addf %47, %46 : vector<8x128xf32>
    %49 = arith.divf %47, %48 : vector<8x128xf32>
    %50 = vector.extract_strided_slice %40 {offsets = [0, 128], sizes = [8, 128], strides = [1, 1]} : vector<8x384xf32> to vector<8x128xf32>
    %51 = vector.extract_strided_slice %41 {offsets = [0, 128], sizes = [8, 128], strides = [1, 1]} : vector<8x384xf32> to vector<8x128xf32>
    %52 = arith.addf %50, %51 : vector<8x128xf32>
    %53 = arith.negf %52 : vector<8x128xf32>
    %54 = math.exp %53 : vector<8x128xf32>
    %cst_21 = arith.constant 1.000000e+00 : f32
    %55 = vector.broadcast %cst_21 : f32 to vector<8x128xf32>
    %56 = arith.addf %55, %54 : vector<8x128xf32>
    %57 = arith.divf %55, %56 : vector<8x128xf32>
    %58 = vector.extract_strided_slice %40 {offsets = [0, 256], sizes = [8, 128], strides = [1, 1]} : vector<8x384xf32> to vector<8x128xf32>
    %59 = vector.extract_strided_slice %41 {offsets = [0, 256], sizes = [8, 128], strides = [1, 1]} : vector<8x384xf32> to vector<8x128xf32>
    %60 = vector.broadcast %8 : vector<1x128xf32> to vector<8x128xf32>
    %61 = arith.addf %59, %60 : vector<8x128xf32>
    %62 = arith.mulf %49, %61 : vector<8x128xf32>
    %63 = arith.addf %58, %62 : vector<8x128xf32>
    %64 = math.tanh %63 : vector<8x128xf32>
    %cst_22 = arith.constant 1.000000e+00 : f32
    %65 = vector.broadcast %cst_22 : f32 to vector<8x128xf32>
    %66 = arith.subf %65, %57 : vector<8x128xf32>
    %67 = arith.mulf %66, %64 : vector<8x128xf32>
    %68 = arith.mulf %57, %39 : vector<8x128xf32>
    %69 = arith.addf %67, %68 : vector<8x128xf32>
    %c16 = arith.constant 16 : index
    %c0_23 = arith.constant 0 : index
    %70 = vector.load %arg6[%c16, %c0_23] : memref<64x384xf32, #tpu.memory_space<vmem>>, vector<8x384xf32>
    %cst_24 = arith.constant dense<0.000000e+00> : vector<8x384xf32>
    %71 = tpu.matmul %69, %7, %cst_24 {dimension_numbers = #tpu.dot_dimension_numbers<[1], [0], [0], [1], [0, 0, 1, 1], [], []>} : vector<8x128xf32>, vector<128x384xf32>, vector<8x384xf32> -> vector<8x384xf32>
    %72 = vector.extract_strided_slice %70 {offsets = [0, 0], sizes = [8, 128], strides = [1, 1]} : vector<8x384xf32> to vector<8x128xf32>
    %73 = vector.extract_strided_slice %71 {offsets = [0, 0], sizes = [8, 128], strides = [1, 1]} : vector<8x384xf32> to vector<8x128xf32>
    %74 = arith.addf %72, %73 : vector<8x128xf32>
    %75 = arith.negf %74 : vector<8x128xf32>
    %76 = math.exp %75 : vector<8x128xf32>
    %cst_25 = arith.constant 1.000000e+00 : f32
    %77 = vector.broadcast %cst_25 : f32 to vector<8x128xf32>
    %78 = arith.addf %77, %76 : vector<8x128xf32>
    %79 = arith.divf %77, %78 : vector<8x128xf32>
    %80 = vector.extract_strided_slice %70 {offsets = [0, 128], sizes = [8, 128], strides = [1, 1]} : vector<8x384xf32> to vector<8x128xf32>
    %81 = vector.extract_strided_slice %71 {offsets = [0, 128], sizes = [8, 128], strides = [1, 1]} : vector<8x384xf32> to vector<8x128xf32>
    %82 = arith.addf %80, %81 : vector<8x128xf32>
    %83 = arith.negf %82 : vector<8x128xf32>
    %84 = math.exp %83 : vector<8x128xf32>
    %cst_26 = arith.constant 1.000000e+00 : f32
    %85 = vector.broadcast %cst_26 : f32 to vector<8x128xf32>
    %86 = arith.addf %85, %84 : vector<8x128xf32>
    %87 = arith.divf %85, %86 : vector<8x128xf32>
    %88 = vector.extract_strided_slice %70 {offsets = [0, 256], sizes = [8, 128], strides = [1, 1]} : vector<8x384xf32> to vector<8x128xf32>
    %89 = vector.extract_strided_slice %71 {offsets = [0, 256], sizes = [8, 128], strides = [1, 1]} : vector<8x384xf32> to vector<8x128xf32>
    %90 = vector.broadcast %8 : vector<1x128xf32> to vector<8x128xf32>
    %91 = arith.addf %89, %90 : vector<8x128xf32>
    %92 = arith.mulf %79, %91 : vector<8x128xf32>
    %93 = arith.addf %88, %92 : vector<8x128xf32>
    %94 = math.tanh %93 : vector<8x128xf32>
    %cst_27 = arith.constant 1.000000e+00 : f32
    %95 = vector.broadcast %cst_27 : f32 to vector<8x128xf32>
    %96 = arith.subf %95, %87 : vector<8x128xf32>
    %97 = arith.mulf %96, %94 : vector<8x128xf32>
    %98 = arith.mulf %87, %69 : vector<8x128xf32>
    %99 = arith.addf %97, %98 : vector<8x128xf32>
    %c24 = arith.constant 24 : index
    %c0_28 = arith.constant 0 : index
    %100 = vector.load %arg6[%c24, %c0_28] : memref<64x384xf32, #tpu.memory_space<vmem>>, vector<8x384xf32>
    %cst_29 = arith.constant dense<0.000000e+00> : vector<8x384xf32>
    %101 = tpu.matmul %99, %7, %cst_29 {dimension_numbers = #tpu.dot_dimension_numbers<[1], [0], [0], [1], [0, 0, 1, 1], [], []>} : vector<8x128xf32>, vector<128x384xf32>, vector<8x384xf32> -> vector<8x384xf32>
    %102 = vector.extract_strided_slice %100 {offsets = [0, 0], sizes = [8, 128], strides = [1, 1]} : vector<8x384xf32> to vector<8x128xf32>
    %103 = vector.extract_strided_slice %101 {offsets = [0, 0], sizes = [8, 128], strides = [1, 1]} : vector<8x384xf32> to vector<8x128xf32>
    %104 = arith.addf %102, %103 : vector<8x128xf32>
    %105 = arith.negf %104 : vector<8x128xf32>
    %106 = math.exp %105 : vector<8x128xf32>
    %cst_30 = arith.constant 1.000000e+00 : f32
    %107 = vector.broadcast %cst_30 : f32 to vector<8x128xf32>
    %108 = arith.addf %107, %106 : vector<8x128xf32>
    %109 = arith.divf %107, %108 : vector<8x128xf32>
    %110 = vector.extract_strided_slice %100 {offsets = [0, 128], sizes = [8, 128], strides = [1, 1]} : vector<8x384xf32> to vector<8x128xf32>
    %111 = vector.extract_strided_slice %101 {offsets = [0, 128], sizes = [8, 128], strides = [1, 1]} : vector<8x384xf32> to vector<8x128xf32>
    %112 = arith.addf %110, %111 : vector<8x128xf32>
    %113 = arith.negf %112 : vector<8x128xf32>
    %114 = math.exp %113 : vector<8x128xf32>
    %cst_31 = arith.constant 1.000000e+00 : f32
    %115 = vector.broadcast %cst_31 : f32 to vector<8x128xf32>
    %116 = arith.addf %115, %114 : vector<8x128xf32>
    %117 = arith.divf %115, %116 : vector<8x128xf32>
    %118 = vector.extract_strided_slice %100 {offsets = [0, 256], sizes = [8, 128], strides = [1, 1]} : vector<8x384xf32> to vector<8x128xf32>
    %119 = vector.extract_strided_slice %101 {offsets = [0, 256], sizes = [8, 128], strides = [1, 1]} : vector<8x384xf32> to vector<8x128xf32>
    %120 = vector.broadcast %8 : vector<1x128xf32> to vector<8x128xf32>
    %121 = arith.addf %119, %120 : vector<8x128xf32>
    %122 = arith.mulf %109, %121 : vector<8x128xf32>
    %123 = arith.addf %118, %122 : vector<8x128xf32>
    %124 = math.tanh %123 : vector<8x128xf32>
    %cst_32 = arith.constant 1.000000e+00 : f32
    %125 = vector.broadcast %cst_32 : f32 to vector<8x128xf32>
    %126 = arith.subf %125, %117 : vector<8x128xf32>
    %127 = arith.mulf %126, %124 : vector<8x128xf32>
    %128 = arith.mulf %117, %99 : vector<8x128xf32>
    %129 = arith.addf %127, %128 : vector<8x128xf32>
    %c32 = arith.constant 32 : index
    %c0_33 = arith.constant 0 : index
    %130 = vector.load %arg6[%c32, %c0_33] : memref<64x384xf32, #tpu.memory_space<vmem>>, vector<8x384xf32>
    %cst_34 = arith.constant dense<0.000000e+00> : vector<8x384xf32>
    %131 = tpu.matmul %129, %7, %cst_34 {dimension_numbers = #tpu.dot_dimension_numbers<[1], [0], [0], [1], [0, 0, 1, 1], [], []>} : vector<8x128xf32>, vector<128x384xf32>, vector<8x384xf32> -> vector<8x384xf32>
    %132 = vector.extract_strided_slice %130 {offsets = [0, 0], sizes = [8, 128], strides = [1, 1]} : vector<8x384xf32> to vector<8x128xf32>
    %133 = vector.extract_strided_slice %131 {offsets = [0, 0], sizes = [8, 128], strides = [1, 1]} : vector<8x384xf32> to vector<8x128xf32>
    %134 = arith.addf %132, %133 : vector<8x128xf32>
    %135 = arith.negf %134 : vector<8x128xf32>
    %136 = math.exp %135 : vector<8x128xf32>
    %cst_35 = arith.constant 1.000000e+00 : f32
    %137 = vector.broadcast %cst_35 : f32 to vector<8x128xf32>
    %138 = arith.addf %137, %136 : vector<8x128xf32>
    %139 = arith.divf %137, %138 : vector<8x128xf32>
    %140 = vector.extract_strided_slice %130 {offsets = [0, 128], sizes = [8, 128], strides = [1, 1]} : vector<8x384xf32> to vector<8x128xf32>
    %141 = vector.extract_strided_slice %131 {offsets = [0, 128], sizes = [8, 128], strides = [1, 1]} : vector<8x384xf32> to vector<8x128xf32>
    %142 = arith.addf %140, %141 : vector<8x128xf32>
    %143 = arith.negf %142 : vector<8x128xf32>
    %144 = math.exp %143 : vector<8x128xf32>
    %cst_36 = arith.constant 1.000000e+00 : f32
    %145 = vector.broadcast %cst_36 : f32 to vector<8x128xf32>
    %146 = arith.addf %145, %144 : vector<8x128xf32>
    %147 = arith.divf %145, %146 : vector<8x128xf32>
    %148 = vector.extract_strided_slice %130 {offsets = [0, 256], sizes = [8, 128], strides = [1, 1]} : vector<8x384xf32> to vector<8x128xf32>
    %149 = vector.extract_strided_slice %131 {offsets = [0, 256], sizes = [8, 128], strides = [1, 1]} : vector<8x384xf32> to vector<8x128xf32>
    %150 = vector.broadcast %8 : vector<1x128xf32> to vector<8x128xf32>
    %151 = arith.addf %149, %150 : vector<8x128xf32>
    %152 = arith.mulf %139, %151 : vector<8x128xf32>
    %153 = arith.addf %148, %152 : vector<8x128xf32>
    %154 = math.tanh %153 : vector<8x128xf32>
    %cst_37 = arith.constant 1.000000e+00 : f32
    %155 = vector.broadcast %cst_37 : f32 to vector<8x128xf32>
    %156 = arith.subf %155, %147 : vector<8x128xf32>
    %157 = arith.mulf %156, %154 : vector<8x128xf32>
    %158 = arith.mulf %147, %129 : vector<8x128xf32>
    %159 = arith.addf %157, %158 : vector<8x128xf32>
    %c40 = arith.constant 40 : index
    %c0_38 = arith.constant 0 : index
    %160 = vector.load %arg6[%c40, %c0_38] : memref<64x384xf32, #tpu.memory_space<vmem>>, vector<8x384xf32>
    %cst_39 = arith.constant dense<0.000000e+00> : vector<8x384xf32>
    %161 = tpu.matmul %159, %7, %cst_39 {dimension_numbers = #tpu.dot_dimension_numbers<[1], [0], [0], [1], [0, 0, 1, 1], [], []>} : vector<8x128xf32>, vector<128x384xf32>, vector<8x384xf32> -> vector<8x384xf32>
    %162 = vector.extract_strided_slice %160 {offsets = [0, 0], sizes = [8, 128], strides = [1, 1]} : vector<8x384xf32> to vector<8x128xf32>
    %163 = vector.extract_strided_slice %161 {offsets = [0, 0], sizes = [8, 128], strides = [1, 1]} : vector<8x384xf32> to vector<8x128xf32>
    %164 = arith.addf %162, %163 : vector<8x128xf32>
    %165 = arith.negf %164 : vector<8x128xf32>
    %166 = math.exp %165 : vector<8x128xf32>
    %cst_40 = arith.constant 1.000000e+00 : f32
    %167 = vector.broadcast %cst_40 : f32 to vector<8x128xf32>
    %168 = arith.addf %167, %166 : vector<8x128xf32>
    %169 = arith.divf %167, %168 : vector<8x128xf32>
    %170 = vector.extract_strided_slice %160 {offsets = [0, 128], sizes = [8, 128], strides = [1, 1]} : vector<8x384xf32> to vector<8x128xf32>
    %171 = vector.extract_strided_slice %161 {offsets = [0, 128], sizes = [8, 128], strides = [1, 1]} : vector<8x384xf32> to vector<8x128xf32>
    %172 = arith.addf %170, %171 : vector<8x128xf32>
    %173 = arith.negf %172 : vector<8x128xf32>
    %174 = math.exp %173 : vector<8x128xf32>
    %cst_41 = arith.constant 1.000000e+00 : f32
    %175 = vector.broadcast %cst_41 : f32 to vector<8x128xf32>
    %176 = arith.addf %175, %174 : vector<8x128xf32>
    %177 = arith.divf %175, %176 : vector<8x128xf32>
    %178 = vector.extract_strided_slice %160 {offsets = [0, 256], sizes = [8, 128], strides = [1, 1]} : vector<8x384xf32> to vector<8x128xf32>
    %179 = vector.extract_strided_slice %161 {offsets = [0, 256], sizes = [8, 128], strides = [1, 1]} : vector<8x384xf32> to vector<8x128xf32>
    %180 = vector.broadcast %8 : vector<1x128xf32> to vector<8x128xf32>
    %181 = arith.addf %179, %180 : vector<8x128xf32>
    %182 = arith.mulf %169, %181 : vector<8x128xf32>
    %183 = arith.addf %178, %182 : vector<8x128xf32>
    %184 = math.tanh %183 : vector<8x128xf32>
    %cst_42 = arith.constant 1.000000e+00 : f32
    %185 = vector.broadcast %cst_42 : f32 to vector<8x128xf32>
    %186 = arith.subf %185, %177 : vector<8x128xf32>
    %187 = arith.mulf %186, %184 : vector<8x128xf32>
    %188 = arith.mulf %177, %159 : vector<8x128xf32>
    %189 = arith.addf %187, %188 : vector<8x128xf32>
    %c48 = arith.constant 48 : index
    %c0_43 = arith.constant 0 : index
    %190 = vector.load %arg6[%c48, %c0_43] : memref<64x384xf32, #tpu.memory_space<vmem>>, vector<8x384xf32>
    %cst_44 = arith.constant dense<0.000000e+00> : vector<8x384xf32>
    %191 = tpu.matmul %189, %7, %cst_44 {dimension_numbers = #tpu.dot_dimension_numbers<[1], [0], [0], [1], [0, 0, 1, 1], [], []>} : vector<8x128xf32>, vector<128x384xf32>, vector<8x384xf32> -> vector<8x384xf32>
    %192 = vector.extract_strided_slice %190 {offsets = [0, 0], sizes = [8, 128], strides = [1, 1]} : vector<8x384xf32> to vector<8x128xf32>
    %193 = vector.extract_strided_slice %191 {offsets = [0, 0], sizes = [8, 128], strides = [1, 1]} : vector<8x384xf32> to vector<8x128xf32>
    %194 = arith.addf %192, %193 : vector<8x128xf32>
    %195 = arith.negf %194 : vector<8x128xf32>
    %196 = math.exp %195 : vector<8x128xf32>
    %cst_45 = arith.constant 1.000000e+00 : f32
    %197 = vector.broadcast %cst_45 : f32 to vector<8x128xf32>
    %198 = arith.addf %197, %196 : vector<8x128xf32>
    %199 = arith.divf %197, %198 : vector<8x128xf32>
    %200 = vector.extract_strided_slice %190 {offsets = [0, 128], sizes = [8, 128], strides = [1, 1]} : vector<8x384xf32> to vector<8x128xf32>
    %201 = vector.extract_strided_slice %191 {offsets = [0, 128], sizes = [8, 128], strides = [1, 1]} : vector<8x384xf32> to vector<8x128xf32>
    %202 = arith.addf %200, %201 : vector<8x128xf32>
    %203 = arith.negf %202 : vector<8x128xf32>
    %204 = math.exp %203 : vector<8x128xf32>
    %cst_46 = arith.constant 1.000000e+00 : f32
    %205 = vector.broadcast %cst_46 : f32 to vector<8x128xf32>
    %206 = arith.addf %205, %204 : vector<8x128xf32>
    %207 = arith.divf %205, %206 : vector<8x128xf32>
    %208 = vector.extract_strided_slice %190 {offsets = [0, 256], sizes = [8, 128], strides = [1, 1]} : vector<8x384xf32> to vector<8x128xf32>
    %209 = vector.extract_strided_slice %191 {offsets = [0, 256], sizes = [8, 128], strides = [1, 1]} : vector<8x384xf32> to vector<8x128xf32>
    %210 = vector.broadcast %8 : vector<1x128xf32> to vector<8x128xf32>
    %211 = arith.addf %209, %210 : vector<8x128xf32>
    %212 = arith.mulf %199, %211 : vector<8x128xf32>
    %213 = arith.addf %208, %212 : vector<8x128xf32>
    %214 = math.tanh %213 : vector<8x128xf32>
    %cst_47 = arith.constant 1.000000e+00 : f32
    %215 = vector.broadcast %cst_47 : f32 to vector<8x128xf32>
    %216 = arith.subf %215, %207 : vector<8x128xf32>
    %217 = arith.mulf %216, %214 : vector<8x128xf32>
    %218 = arith.mulf %207, %189 : vector<8x128xf32>
    %219 = arith.addf %217, %218 : vector<8x128xf32>
    %c56 = arith.constant 56 : index
    %c0_48 = arith.constant 0 : index
    %220 = vector.load %arg6[%c56, %c0_48] : memref<64x384xf32, #tpu.memory_space<vmem>>, vector<8x384xf32>
    %cst_49 = arith.constant dense<0.000000e+00> : vector<8x384xf32>
    %221 = tpu.matmul %219, %7, %cst_49 {dimension_numbers = #tpu.dot_dimension_numbers<[1], [0], [0], [1], [0, 0, 1, 1], [], []>} : vector<8x128xf32>, vector<128x384xf32>, vector<8x384xf32> -> vector<8x384xf32>
    %222 = vector.extract_strided_slice %220 {offsets = [0, 0], sizes = [8, 128], strides = [1, 1]} : vector<8x384xf32> to vector<8x128xf32>
    %223 = vector.extract_strided_slice %221 {offsets = [0, 0], sizes = [8, 128], strides = [1, 1]} : vector<8x384xf32> to vector<8x128xf32>
    %224 = arith.addf %222, %223 : vector<8x128xf32>
    %225 = arith.negf %224 : vector<8x128xf32>
    %226 = math.exp %225 : vector<8x128xf32>
    %cst_50 = arith.constant 1.000000e+00 : f32
    %227 = vector.broadcast %cst_50 : f32 to vector<8x128xf32>
    %228 = arith.addf %227, %226 : vector<8x128xf32>
    %229 = arith.divf %227, %228 : vector<8x128xf32>
    %230 = vector.extract_strided_slice %220 {offsets = [0, 128], sizes = [8, 128], strides = [1, 1]} : vector<8x384xf32> to vector<8x128xf32>
    %231 = vector.extract_strided_slice %221 {offsets = [0, 128], sizes = [8, 128], strides = [1, 1]} : vector<8x384xf32> to vector<8x128xf32>
    %232 = arith.addf %230, %231 : vector<8x128xf32>
    %233 = arith.negf %232 : vector<8x128xf32>
    %234 = math.exp %233 : vector<8x128xf32>
    %cst_51 = arith.constant 1.000000e+00 : f32
    %235 = vector.broadcast %cst_51 : f32 to vector<8x128xf32>
    %236 = arith.addf %235, %234 : vector<8x128xf32>
    %237 = arith.divf %235, %236 : vector<8x128xf32>
    %238 = vector.extract_strided_slice %220 {offsets = [0, 256], sizes = [8, 128], strides = [1, 1]} : vector<8x384xf32> to vector<8x128xf32>
    %239 = vector.extract_strided_slice %221 {offsets = [0, 256], sizes = [8, 128], strides = [1, 1]} : vector<8x384xf32> to vector<8x128xf32>
    %240 = vector.broadcast %8 : vector<1x128xf32> to vector<8x128xf32>
    %241 = arith.addf %239, %240 : vector<8x128xf32>
    %242 = arith.mulf %229, %241 : vector<8x128xf32>
    %243 = arith.addf %238, %242 : vector<8x128xf32>
    %244 = math.tanh %243 : vector<8x128xf32>
    %cst_52 = arith.constant 1.000000e+00 : f32
    %245 = vector.broadcast %cst_52 : f32 to vector<8x128xf32>
    %246 = arith.subf %245, %237 : vector<8x128xf32>
    %247 = arith.mulf %246, %244 : vector<8x128xf32>
    %248 = arith.mulf %237, %219 : vector<8x128xf32>
    %249 = arith.addf %247, %248 : vector<8x128xf32>
    %c0_53 = arith.constant 0 : index
    %c0_54 = arith.constant 0 : index
    %250 = vector.load %arg5[%c0_53, %c0_54] : memref<8x128xf32, #tpu.memory_space<vmem>>, vector<8x128xf32>
    tpu.vector_store %arg5[%c0_53, %c0_54], %249 {strides = array<i32>} : memref<8x128xf32, #tpu.memory_space<vmem>>, vector<8x128xf32>,
    return
  }
}

</mosaic_0001>

<bundles_post_ra>
// kernel: history_encoder_forward.1
= control target key start
LH: loop header
LB: loop body
LE: loop exit
PB: predicated region body
PF: predicated region fallthrough
CT: control target
= control target key end

     0   :  { %v2851_v3 = vmov 0.0   ;;  %vm2853_vm0 = vmmov 0   ;;  %s3598_s1 = inlined_call_operand.vmem [shape: f32[128,384], index: 1, kind: input, shape index: {}]   ;;  %s3599_s0 = inlined_call_operand.vmem [shape: f32[64,128], index: 0, kind: input, shape index: {}]   ;;  %s3600_s3 = inlined_call_operand.vmem [shape: f32[128,384], index: 3, kind: input, shape index: {}]   ;;  %s3601_s2 = inlined_call_operand.vmem [shape: f32[1,384], index: 2, kind: input, shape index: {}]   ;;  %s3602_s4 = inlined_call_operand.vmem [shape: f32[1,128], index: 4, kind: input, shape index: {}]   ;;  %s3603_s5 = inlined_call_operand.vmem [shape: f32[8,128], index: 5, kind: output, shape index: {}]  }
   0x1   :  { %v29_v0 = vld [vmem:[%s3598_s1 + $0x8] sm:$0xff]  ;;  %v32_v1 = vld [vmem:[%s3598_s1 + $0x20] sm:$0xff]  ;;  %157 = vmatprep.mubr.f32.mxu0 %v2851_v3  ;;  %v31_v5 = vld [vmem:[%s3598_s1 + $0x18] sm:$0xff] }
   0x2   :  { %v28_v2 = vld [vmem:[%s3598_s1] sm:$0xff]  ;;  %v2224_v4 = vpack.c.bf16 %v32_v1, %v29_v0  ;;  %v35_v6 = vld [vmem:[%s3598_s1 + $0x38] sm:$0xff]  ;;  %v38_v7 = vld [vmem:[%s3598_s1 + $0x50] sm:$0xff] }
   0x3   :  { %v2226_v8 = vpack.c.bf16 %v31_v5, %v28_v2  ;;  %v2228_v9 = vpack.c.bf16 %v38_v7, %v35_v6  ;;  %v34_v10 = vld [vmem:[%s3598_s1 + $0x30] sm:$0xff]  ;;  %v37_v11 = vld [vmem:[%s3598_s1 + $0x48] sm:$0xff]  ;;  %v44_v13 = vld [vmem:[%s3598_s1 + $0x80] sm:$0xff] }
   0x4   :  { %v41_v12 = vld [vmem:[%s3598_s1 + $0x68] sm:$0xff]  ;;  %2225 = vmatprep.subr.bf16.mxu0 %v2224_v4  ;;  %v2230_v14 = vpack.c.bf16 %v37_v11, %v34_v10  ;;  %v40_v16 = vld [vmem:[%s3598_s1 + $0x60] sm:$0xff]  ;;  %v43_v17 = vld [vmem:[%s3598_s1 + $0x78] sm:$0xff] }
   0x5   :  { %2227 = vmatpush1.bf16.msra.mxu0 %v2226_v8  ;;  %v2232_v15 = vpack.c.bf16 %v44_v13, %v41_v12  ;;  %v47_v18 = vld [vmem:[%s3598_s1 + $0x98] sm:$0xff]  ;;  %v50_v19 = vld [vmem:[%s3598_s1 + $0xb0] sm:$0xff]  ;;  %v2234_v20 = vpack.c.bf16 %v43_v17, %v40_v16  ;;  %v49_v23 = vld [vmem:[%s3598_s1 + $0xa8] sm:$0xff] }
   0x6   :  { %2229 = vmatprep.subr.bf16.mxu0 %v2228_v9  ;;  %v46_v21 = vld [vmem:[%s3598_s1 + $0x90] sm:$0xff]  ;;  %v2236_v22 = vpack.c.bf16 %v50_v19, %v47_v18  ;;  %v33_v25 = vld [vmem:[%s3598_s1 + $0x28] sm:$0xff]  ;;  %v56_v27 = vld [vmem:[%s3598_s1 + $0xe0] sm:$0xff] }
   0x7   :  { %v30_v24 = vld [vmem:[%s3598_s1 + $0x10] sm:$0xff]  ;;  %v53_v26 = vld [vmem:[%s3598_s1 + $0xc8] sm:$0xff]  ;;  %v36_v29 = vld [vmem:[%s3598_s1 + $0x40] sm:$0xff]  ;;  %v2238_v31 = vpack.c.bf16 %v49_v23, %v46_v21 }
   0x8   :  { %v2256_v28 = vpack.c.bf16 %v33_v25, %v30_v24  ;;  %v39_v30 = vld [vmem:[%s3598_s1 + $0x58] sm:$0xff]  ;;  %v52_v32 = vld [vmem:[%s3598_s1 + $0xc0] sm:$0xff]  ;;  %v2240_v34 = vpack.c.bf16 %v56_v27, %v53_v26  ;;  %v42_v37 = vld [vmem:[%s3598_s1 + $0x70] sm:$0xff] }
   0x9   :  { %2231 = vmatpush1.bf16.msra.mxu0 %v2230_v14  ;;  %v2260_v33 = vpack.c.bf16 %v39_v30, %v36_v29  ;;  %v55_v35 = vld [vmem:[%s3598_s1 + $0xd8] sm:$0xff]  ;;  %v2960_v36 = vld [vmem:[%s3599_s0] sm:$0xff]  ;;  %v62_v39 = vld [vmem:[%s3598_s1 + $0x110] sm:$0xff] }
   0xa   :  { %2233 = vmatprep.subr.bf16.mxu0 %v2232_v15  ;;  %2257 = vmatprep.subr.bf16.mxu1 %v2256_v28  ;;  %v59_v38 = vld [vmem:[%s3598_s1 + $0xf8] sm:$0xff]  ;;  %v45_v40 = vld [vmem:[%s3598_s1 + $0x88] sm:$0xff]  ;;  %v2242_v42 = vpack.c.bf16 %v55_v35, %v52_v32  ;;  %v48_v43 = vld [vmem:[%s3598_s1 + $0xa0] sm:$0xff] }
   0xb   :  { %2259 = vmatpush3.bf16.msra.mxu1 %v2256_v28  ;;  %1932 = vmatprep.mubr.f32.mxu1 %v2960_v36  ;;  %v2264_v41 = vpack.c.bf16 %v45_v40, %v42_v37  ;;  %v51_v44 = vld [vmem:[%s3598_s1 + $0xb8] sm:$0xff]  ;;  %v2244_v45 = vpack.c.bf16 %v62_v39, %v59_v38  ;;  %v58_v46 = vld [vmem:[%s3598_s1 + $0xf0] sm:$0xff]  ;;  %v61_v47 = vld [vmem:[%s3598_s1 + $0x108] sm:$0xff]  ;;  %v2852_v40 = vmov 0.0|0.0  }
   0xc   :  { %2261 = vmatprep.subr.bf16.mxu1 %v2260_v33  ;;  %v65_v48 = vld [vmem:[%s3598_s1 + $0x128] sm:$0xff]  ;;  %v68_v49 = vld [vmem:[%s3598_s1 + $0x140] sm:$0xff]  ;;  %v2268_v50 = vpack.c.bf16 %v51_v44, %v48_v43  ;;  %v54_v51 = vld [vmem:[%s3598_s1 + $0xd0] sm:$0xff]  ;;  %v2246_v53 = vpack.c.bf16 %v61_v47, %v58_v46 }
   0xd   :  { %2235 = vmatpush1.bf16.msra.mxu0 %v2234_v20  ;;  %v57_v52 = vld [vmem:[%s3598_s1 + $0xe8] sm:$0xff]  ;;  %v2248_v54 = vpack.c.bf16 %v68_v49, %v65_v48  ;;  %v64_v55 = vld [vmem:[%s3598_s1 + $0x120] sm:$0xff]  ;;  %v67_v56 = vld [vmem:[%s3598_s1 + $0x138] sm:$0xff] }
   0xe   :  { %2237 = vmatprep.subr.bf16.mxu0 %v2236_v22  ;;  %v71_v57 = vld [vmem:[%s3598_s1 + $0x158] sm:$0xff]  ;;  %v74_v58 = vld [vmem:[%s3598_s1 + $0x170] sm:$0xff]  ;;  %v2272_v59 = vpack.c.bf16 %v57_v52, %v54_v51  ;;  %v60_v60 = vld [vmem:[%s3598_s1 + $0x100] sm:$0xff]  ;;  %v2250_v62 = vpack.c.bf16 %v67_v56, %v64_v55 }
   0xf   :  { %2263 = vmatpush3.bf16.msra.mxu1 %v2260_v33  ;;  %v63_v61 = vld [vmem:[%s3598_s1 + $0x118] sm:$0xff]  ;;  %v2252_v63 = vpack.c.bf16 %v74_v58, %v71_v57  ;;  %v70_v0 = vld [vmem:[%s3598_s1 + $0x150] sm:$0xff]  ;;  %v73_v1 = vld [vmem:[%s3598_s1 + $0x168] sm:$0xff] }
  0x10   :  { %2265 = vmatprep.subr.bf16.mxu1 %v2264_v41  ;;  %v336_v2 = vld [vmem:[%s3600_s3 + $0x8] sm:$0xff]  ;;  %v339_v4 = vld [vmem:[%s3600_s3 + $0x20] sm:$0xff]  ;;  %v2276_v5 = vpack.c.bf16 %v63_v61, %v60_v60  ;;  %v66_v6 = vld [vmem:[%s3598_s1 + $0x130] sm:$0xff]  ;;  %v2254_v8 = vpack.c.bf16 %v73_v1, %v70_v0 }
  0x11   :  { %2239 = vmatpush1.bf16.msra.mxu0 %v2238_v31  ;;  %v69_v7 = vld [vmem:[%s3598_s1 + $0x148] sm:$0xff]  ;;  %v3035_v9 = vpack.c.bf16 %v339_v4, %v336_v2  ;;  %v335_v10 = vld [vmem:[%s3600_s3] sm:$0xff]  ;;  %v338_v11 = vld [vmem:[%s3600_s3 + $0x18] sm:$0xff] }
  0x12   :  { %2241 = vmatprep.subr.bf16.mxu0 %v2240_v34  ;;  %v342_v12 = vld [vmem:[%s3600_s3 + $0x38] sm:$0xff]  ;;  %v345_v13 = vld [vmem:[%s3600_s3 + $0x50] sm:$0xff]  ;;  %v2280_v14 = vpack.c.bf16 %v69_v7, %v66_v6  ;;  %v72_v15 = vld [vmem:[%s3598_s1 + $0x160] sm:$0xff]  ;;  %v3055_v17 = vpack.c.bf16 %v338_v11, %v335_v10 }
  0x13   :  { %2267 = vmatpush3.bf16.msra.mxu1 %v2264_v41  ;;  %v75_v16 = vld [vmem:[%s3598_s1 + $0x178] sm:$0xff]  ;;  %v3058_v18 = vpack.c.bf16 %v345_v13, %v342_v12  ;;  %v341_v19 = vld [vmem:[%s3600_s3 + $0x30] sm:$0xff]  ;;  %v344_v20 = vld [vmem:[%s3600_s3 + $0x48] sm:$0xff] }
  0x14   :  { %2269 = vmatprep.subr.bf16.mxu1 %v2268_v50  ;;  %v348_v21 = vld [vmem:[%s3600_s3 + $0x68] sm:$0xff]  ;;  %v351_v22 = vld [vmem:[%s3600_s3 + $0x80] sm:$0xff]  ;;  %v2284_v23 = vpack.c.bf16 %v75_v16, %v72_v15  ;;  %v3078_v25 = vpack.c.bf16 %v344_v20, %v341_v19  ;;  %v350_v28 = vld [vmem:[%s3600_s3 + $0x78] sm:$0xff] }
  0x15   :  { %2243 = vmatpush1.bf16.msra.mxu0 %v2242_v42  ;;  %v21_v24 = vld [vmem:[%s3599_s0 + $0x8] sm:$0xff]  ;;  %v3081_v26 = vpack.c.bf16 %v351_v22, %v348_v21  ;;  %v347_v27 = vld [vmem:[%s3600_s3 + $0x60] sm:$0xff]  ;;  %v354_v29 = vld [vmem:[%s3600_s3 + $0x98] sm:$0xff] }
  0x16   :  { %2245 = vmatprep.subr.bf16.mxu0 %v2244_v45  ;;  %v357_v30 = vld [vmem:[%s3600_s3 + $0xb0] sm:$0xff]  ;;  %v340_v32 = vld [vmem:[%s3600_s3 + $0x28] sm:$0xff]  ;;  %v3106_v34 = vpack.c.bf16 %v350_v28, %v347_v27  ;;  %v363_v39 = vld [vmem:[%s3600_s3 + $0xe0] sm:$0xff] }
  0x17   :  { %2271 = vmatpush3.bf16.msra.mxu1 %v2268_v50  ;;  %v337_v31 = vld [vmem:[%s3600_s3 + $0x10] sm:$0xff]  ;;  %v3109_v35 = vpack.c.bf16 %v357_v30, %v354_v29  ;;  %v356_v37 = vld [vmem:[%s3600_s3 + $0xa8] sm:$0xff]  ;;  %v343_v42 = vld [vmem:[%s3600_s3 + $0x40] sm:$0xff] }
  0x18   :  { %2273 = vmatprep.subr.bf16.mxu1 %v2272_v59  ;;  %v22_v33 = vld [vmem:[%s3599_s0 + $0x10] sm:$0xff]  ;;  %v360_v38 = vld [vmem:[%s3600_s3 + $0xc8] sm:$0xff]  ;;  %v3124_v41 = vpack.c.bf16 %v340_v32, %v337_v31  ;;  %v346_v43 = vld [vmem:[%s3600_s3 + $0x58] sm:$0xff] }
  0x19   :  { %2247 = vmatpush1.bf16.msra.mxu0 %v2246_v53  ;;  %v23_v44 = vld [vmem:[%s3599_s0 + $0x18] sm:$0xff]  ;;  %v3140_v46 = vpack.c.bf16 %v363_v39, %v360_v38  ;;  %v359_v47 = vld [vmem:[%s3600_s3 + $0xc0] sm:$0xff]  ;;  %v369_v50 = vld [vmem:[%s3600_s3 + $0x110] sm:$0xff]  ;;  %v3155_v51 = vpack.c.bf16 %v346_v43, %v343_v42 }
  0x1a   :  { %2249 = vmatprep.subr.bf16.mxu0 %v2248_v54  ;;  %v362_v48 = vld [vmem:[%s3600_s3 + $0xd8] sm:$0xff]  ;;  %v349_v52 = vld [vmem:[%s3600_s3 + $0x70] sm:$0xff]  ;;  %v352_v53 = vld [vmem:[%s3600_s3 + $0x88] sm:$0xff] }
  0x1b   :  { %2275 = vmatpush3.bf16.msra.mxu1 %v2272_v59  ;;  %v366_v49 = vld [vmem:[%s3600_s3 + $0xf8] sm:$0xff]  ;;  %v24_v54 = vld [vmem:[%s3599_s0 + $0x20] sm:$0xff]  ;;  %v3169_v55 = vpack.c.bf16 %v362_v48, %v359_v47  ;;  %v365_v57 = vld [vmem:[%s3600_s3 + $0xf0] sm:$0xff]  ;;  %v3187_v61 = vpack.c.bf16 %v352_v53, %v349_v52 }
  0x1c   :  { %2277 = vmatprep.subr.bf16.mxu1 %v2276_v5  ;;  %v3172_v56 = vpack.c.bf16 %v369_v50, %v366_v49  ;;  %v368_v58 = vld [vmem:[%s3600_s3 + $0x108] sm:$0xff]  ;;  %v375_v60 = vld [vmem:[%s3600_s3 + $0x140] sm:$0xff]  ;;  %v26_v2 = vld [vmem:[%s3599_s0 + $0x30] sm:$0xff] }
  0x1d   :  { %2251 = vmatpush1.bf16.msra.mxu0 %v2250_v62  ;;  %v372_v59 = vld [vmem:[%s3600_s3 + $0x128] sm:$0xff]  ;;  %v355_v62 = vld [vmem:[%s3600_s3 + $0xa0] sm:$0xff]  ;;  %v3201_v1 = vpack.c.bf16 %v368_v58, %v365_v57  ;;  %v374_v6 = vld [vmem:[%s3600_s3 + $0x138] sm:$0xff] }
  0x1e   :  { %2253 = vmatprep.subr.bf16.mxu0 %v2252_v63  ;;  %v358_v63 = vld [vmem:[%s3600_s3 + $0xb8] sm:$0xff]  ;;  %v25_v0 = vld [vmem:[%s3599_s0 + $0x28] sm:$0xff]  ;;  %v3207_v4 = vpack.c.bf16 %v375_v60, %v372_v59  ;;  %v361_v11 = vld [vmem:[%s3600_s3 + $0xd0] sm:$0xff] }
  0x1f   :  { %2279 = vmatpush3.bf16.msra.mxu1 %v2276_v5  ;;  %v371_v5 = vld [vmem:[%s3600_s3 + $0x120] sm:$0xff]  ;;  %v378_v7 = vld [vmem:[%s3600_s3 + $0x158] sm:$0xff]  ;;  %v3222_v10 = vpack.c.bf16 %v358_v63, %v355_v62  ;;  %v364_v12 = vld [vmem:[%s3600_s3 + $0xe8] sm:$0xff] }
  0x20   :  { %2281 = vmatprep.subr.bf16.mxu1 %v2280_v14  ;;  %v3233_v13 = vpack.c.bf16 %v374_v6, %v371_v5  ;;  %v377_v16 = vld [vmem:[%s3600_s3 + $0x150] sm:$0xff]  ;;  %v380_v19 = vld [vmem:[%s3600_s3 + $0x168] sm:$0xff]  ;;  %v3248_v20 = vpack.c.bf16 %v364_v12, %v361_v11  ;;  %v367_v21 = vld [vmem:[%s3600_s3 + $0x100] sm:$0xff] }
  0x21   :  { %2255 = vmatpush1.bf16.msra.mxu0 %v2254_v8  ;;  %v381_v8 = vld [vmem:[%s3600_s3 + $0x170] sm:$0xff]  ;;  %v370_v22 = vld [vmem:[%s3600_s3 + $0x118] sm:$0xff]  ;;  %v376_v28 = vld [vmem:[%s3600_s3 + $0x148] sm:$0xff] }
  0x22   :  { %2289 = vmatprep.subr.bf16.mxu0 %v3035_v9  ;;  %v3239_v15 = vpack.c.bf16 %v381_v8, %v378_v7  ;;  %v373_v27 = vld [vmem:[%s3600_s3 + $0x130] sm:$0xff]  ;;  %v379_v30 = vld [vmem:[%s3600_s3 + $0x160] sm:$0xff]  ;;  %v382_v31 = vld [vmem:[%s3600_s3 + $0x178] sm:$0xff] }
  0x23   :  { %2283 = vmatpush3.bf16.msra.mxu1 %v2280_v14  ;;  %v27_v14 = vld [vmem:[%s3599_s0 + $0x38] sm:$0xff]  ;;  %v3278_v29 = vpack.c.bf16 %v376_v28, %v373_v27  ;;  %v3292_v32 = vpack.c.bf16 %v382_v31, %v379_v30  ;;  %v76_v38 = vld [vmem:[%s3601_s2] sm:$0x7] }
  0x24   :  { %158 = vmatmul.mubr.f32.vlgmr.msra.gmra.mrb[0].mxu0 %v2960_v36  ;;  %2285 = vmatprep.subr.bf16.mxu1 %v2284_v23  ;;  %v353_v36 = vld [vmem:[%s3600_s3 + $0x90] sm:$0xff]  ;;  %v3356_v28 = vld [vmem:[%s3602_s4] ss:$0 sm:$0xff] }
  0x25   :  { %2291 = vmatpush1.bf16.msra.mxu0 %v3055_v17  ;;  %163 = vmatprep.mubr.f32.mxu0 %v2851_v3  ;;  %v3137_v45 = vpack.c.bf16 %v356_v37, %v353_v36 }
  0x26   :  { %2293 = vmatprep.subr.bf16.mxu0 %v3058_v18 }
  0x27   :  { %2287 = vmatpush3.bf16.msra.mxu1 %v2284_v23  ;;  %v3261_v23 = vpack.c.bf16 %v380_v19, %v377_v16 }
  0x28   :  { %164 = vmatmul.mubr.f32.gmra.mrb[2].mxu0 %v21_v24  ;;  %2320 = vmatprep.subr.bf16.mxu1 %v2852_v40 }
  0x29   :  { %2295 = vmatpush1.bf16.msra.mxu0 %v3078_v25  ;;  %169 = vmatprep.mubr.f32.mxu0 %v2851_v3 }
  0x2a   :  { %2297 = vmatprep.subr.bf16.mxu0 %v3081_v26  ;;  %1933 = vmatmul.mubr.f32.vlgmr.msra.gmra.mrb[0].mxu1 %v21_v24  ;;  %v3265_v24 = vpack.c.bf16 %v370_v22, %v367_v21 }
  0x2b   :  { %2322 = vmatpush3.bf16.msra.mxu1 %v3124_v41  ;;  %1935 = vmatprep.mubr.f32.mxu1 %v22_v33 }
  0x2c   :  { %170 = vmatmul.mubr.f32.gmra.mrb[4].mxu0 %v22_v33  ;;  %2323 = vmatprep.subr.bf16.mxu1 %v2852_v40  ;;  %v78_v33 = vlaneseq }
  0x2d   :  { %2299 = vmatpush1.bf16.msra.mxu0 %v3106_v34  ;;  %175 = vmatprep.mubr.f32.mxu0 %v2851_v3 }
  0x2e   :  { %2301 = vmatprep.subr.bf16.mxu0 %v3109_v35  ;;  %1936 = vmatmul.mubr.f32.gmra.mrb[2].mxu1 %v23_v44  ;;  %v79_v36 = vshrl.u32 %v78_v33, 7 }
  0x2f   :  { %2325 = vmatpush3.bf16.msra.mxu1 %v3155_v51  ;;  %1938 = vmatprep.mubr.f32.mxu1 %v24_v54 }
  0x30   :  { %176 = vmatmul.mubr.f32.gmra.mrb[6].mxu0 %v23_v44  ;;  %2326 = vmatprep.subr.bf16.mxu1 %v2852_v40  ;;  %v88_v37 = vsub.s32 2, %v79_v36  ;;  %v80_v63 = vsub.s32 0, %v79_v36 }
  0x31   :  { %2303 = vmatpush1.bf16.msra.mxu0 %v3137_v45  ;;  %181 = vmatprep.mubr.f32.mxu0 %v2851_v3 }
  0x32   :  { %2305 = vmatprep.subr.bf16.mxu0 %v3140_v46  ;;  %1939 = vmatmul.mubr.f32.gmra.mrb[4].mxu1 %v25_v0  ;;  %v89_v39 = vrot.slane %v76_v38, %v88_v37 }
  0x33   :  { %2328 = vmatpush3.bf16.msra.mxu1 %v3187_v61  ;;  %1941 = vmatprep.mubr.f32.mxu1 %v26_v2 }
  0x34   :  { %182 = vmatmul.mubr.f32.gmra.mrb[8].mxu0 %v24_v54  ;;  %2329 = vmatprep.subr.bf16.mxu1 %v2852_v40 }
  0x35   :  { %2307 = vmatpush1.bf16.msra.mxu0 %v3169_v55  ;;  %187 = vmatprep.mubr.f32.mxu0 %v2851_v3 }
  0x36   :  { %2309 = vmatprep.subr.bf16.mxu0 %v3172_v56  ;;  %1942 = vmatmul.mubr.f32.gmra.mrb[6].mxu1 %v27_v14 }
  0x37   :  { %2331 = vmatpush3.bf16.msra.mxu1 %v3222_v10  ;;  %1976 = vmatprep.mubr.msk.f32.mxu1 %vm2853_vm0, %v2851_v3 }
  0x38   :  { %188 = vmatmul.mubr.f32.gmra.mrb[10].mxu0 %v25_v0  ;;  %2332 = vmatprep.subr.bf16.mxu1 %v2852_v40  ;;  %v84_v0 = vsub.s32 1, %v79_v36 }
  0x39   :  { %2311 = vmatpush1.bf16.msra.mxu0 %v3201_v1  ;;  %193 = vmatprep.mubr.f32.mxu0 %v2851_v3 }
  0x3a   :  { %2313 = vmatprep.subr.bf16.mxu0 %v3207_v4  ;;  %v3349_v6 = vrot.slane %v76_v38, %v84_v0 }
  0x3b   :  { %2334 = vmatpush3.bf16.msra.mxu1 %v3248_v20 }
  0x3c   :  { %194 = vmatmul.mubr.f32.gmra.mrb[12].mxu0 %v26_v2  ;;  %2335 = vmatprep.subr.bf16.mxu1 %v2852_v40  ;;  %v3347_v2 = vrot.slane %v76_v38, %v80_v63 }
  0x3d   :  { %2315 = vmatpush1.bf16.msra.mxu0 %v3233_v13  ;;  %199 = vmatprep.mubr.f32.mxu0 %v2851_v3 }
  0x3e   :  { %2317 = vmatprep.subr.bf16.mxu0 %v3239_v15 }
  0x3f   :  { %2337 = vmatpush3.bf16.msra.mxu1 %v3265_v24 }
  0x40   :  { %200 = vmatmul.mubr.f32.gmra.mrb[14].mxu0 %v27_v14  ;;  %2338 = vmatprep.subr.bf16.mxu1 %v2852_v40 }
  0x41   :  { %2319 = vmatpush1.bf16.msra.mxu0 %v3261_v23  ;;  %451 = vmatprep.mubr.f32.mxu0 %v2851_v3 }
  0x42   :  { %2345 = vmatprep.subr.bf16.mxu0 %v3035_v9 }
  0x43   :  { %2340 = vmatpush3.bf16.msra.mxu1 %v3278_v29 }
  0x44   :  { %452 = vmatmul.mubr.f32.vlgmr.msra.gmra.mrb[0].mxu0 %v2851_v3  ;;  %2341 = vmatprep.subr.bf16.mxu1 %v2852_v40 }
  0x45   :  { %2347 = vmatpush1.bf16.msra.mxu0 %v3055_v17  ;;  %623 = vmatprep.mubr.f32.mxu0 %v2851_v3 }
  0x46   :  { %2349 = vmatprep.subr.bf16.mxu0 %v3058_v18 }
  0x47   :  { %2343 = vmatpush3.bf16.msra.mxu1 %v3292_v32 }
  0x48   :  { %2376 = vmatprep.subr.bf16.mxu1 %v2852_v40 }
  0x49   :  { %2351 = vmatpush1.bf16.msra.mxu0 %v3078_v25 }
  0x4a   :  { %2353 = vmatprep.subr.bf16.mxu0 %v3081_v26  ;;  %1977 = vmatmul.mubr.f32.vlgmr.msra.gmra.mrb[8].mxu1 %v2851_v3 }
  0x4b   :  { %2378 = vmatpush3.bf16.msra.mxu1 %v3124_v41  ;;  %2011 = vmatprep.mubr.msk.f32.mxu1 %vm2853_vm0, %v2851_v3 }
  0x4c   :  { %2379 = vmatprep.subr.bf16.mxu1 %v2852_v40 }
  0x4d   :  { %2355 = vmatpush1.bf16.msra.mxu0 %v3106_v34 }
  0x4e   :  { %2357 = vmatprep.subr.bf16.mxu0 %v3109_v35 }
  0x4f   :  { %2381 = vmatpush3.bf16.msra.mxu1 %v3155_v51 }
  0x50   :  { %2382 = vmatprep.subr.bf16.mxu1 %v2852_v40 }
  0x51   :  { %2359 = vmatpush1.bf16.msra.mxu0 %v3137_v45 }
  0x52   :  { %2361 = vmatprep.subr.bf16.mxu0 %v3140_v46 }
  0x53   :  { %2384 = vmatpush3.bf16.msra.mxu1 %v3187_v61 }
  0x54   :  { %2385 = vmatprep.subr.bf16.mxu1 %v2852_v40 }
  0x55   :  { %2363 = vmatpush1.bf16.msra.mxu0 %v3169_v55 }
  0x56   :  { %2365 = vmatprep.subr.bf16.mxu0 %v3172_v56 }
  0x57   :  { %2387 = vmatpush3.bf16.msra.mxu1 %v3222_v10 }
  0x58   :  { %2388 = vmatprep.subr.bf16.mxu1 %v2852_v40 }
  0x59   :  { %2367 = vmatpush1.bf16.msra.mxu0 %v3201_v1 }
  0x5a   :  { %2369 = vmatprep.subr.bf16.mxu0 %v3207_v4 }
  0x5b   :  { %2390 = vmatpush3.bf16.msra.mxu1 %v3248_v20 }
  0x5c   :  { %2391 = vmatprep.subr.bf16.mxu1 %v2852_v40 }
  0x5d   :  { %2371 = vmatpush1.bf16.msra.mxu0 %v3233_v13 }
  0x5e   :  { %2373 = vmatprep.subr.bf16.mxu0 %v3239_v15 }
  0x5f   :  { %2393 = vmatpush3.bf16.msra.mxu1 %v3265_v24 }
  0x60   :  { %2394 = vmatprep.subr.bf16.mxu1 %v2852_v40 }
  0x61   :  { %2375 = vmatpush1.bf16.msra.mxu0 %v3261_v23 }
  0x62   :  { %2401 = vmatprep.subr.bf16.mxu0 %v3035_v9 }
  0x63   :  { %2396 = vmatpush3.bf16.msra.mxu1 %v3278_v29 }
  0x64   :  { %2397 = vmatprep.subr.bf16.mxu1 %v2852_v40 }
  0x67   :  { %2399 = vmatpush3.bf16.msra.mxu1 %v3292_v32 }
  0x68   :  { %2432 = vmatprep.subr.bf16.mxu1 %v2852_v40 }
  0xfd   :  { %v1934_v42 = vpop.f32.mrb[0].mxu1 }
  0xfe   :  { %v3333_v43 = vadd.f32 %v1934_v42, %v89_v39  ;;  %v272_v44 = vpop.f32.mrb[1].mxu1 }
  0xff   :  { %v273_v36 = vadd.f32 %v272_v44, %v89_v39 }
 0x101   :  { %v1937_v47 = vpop.f32.mrb[2].mxu1 }
 0x102   :  { %v3335_v48 = vadd.f32 %v1937_v47, %v89_v39  ;;  %v282_v49 = vpop.f32.mrb[3].mxu1 }
 0x103   :  { %v3337_v50 = vadd.f32 %v282_v49, %v89_v39 }
 0x105   :  { %v1940_v52 = vpop.f32.mrb[4].mxu1 }
 0x106   :  { %v3339_v53 = vadd.f32 %v1940_v52, %v89_v39  ;;  %v292_v54 = vpop.f32.mrb[5].mxu1 }
 0x107   :  { %v3341_v57 = vadd.f32 %v292_v54, %v89_v39 }
 0x109   :  { %v1943_v58 = vpop.f32.mrb[6].mxu1 }
 0x10a   :  { %v3343_v59 = vadd.f32 %v1943_v58, %v89_v39  ;;  %v302_v60 = vpop.f32.mrb[7].mxu1 }
 0x10b   :  { %v3345_v62 = vadd.f32 %v302_v60, %v89_v39 }
 0x117   :  { %v453_v5 = vpop.f32.mrb[0].mxu0 }
 0x118   :  { %v2736_v7 = vadd.f32 %v453_v5, %v3347_v2  ;;  %v455_v8 = vpop.f32.mrb[1].mxu0 }
 0x119   :  { %v2737_v12 = vadd.f32 %v455_v8, %v3349_v6 }
 0x11a   :  { %v1723_v11 = vmul.f32 -1.442695, %v2736_v7 }
 0x11b   :  { %v1724_v14 = vmul.f32 -1.442695, %v2737_v12 }
 0x11c   :  { %2771 = vpow2.f32 %v1723_v11 }
 0x11d   :  { %v524_v16 = vpop.f32.mrb[8].mxu1  ;;  %2773 = vpow2.f32 %v1724_v14 }
 0x11e   :  { %v1978_v19 = vpop.f32.mrb[9].mxu1  ;;  %v548_v31 = vadd.f32 %v3356_v28, %v524_v16 }
 0x126   :  { %v2772_v21 = vpop.eup %2771 }
 0x127   :  { %v532_v22 = vadd.f32 1.0, %v2772_v21  ;;  %v2774_v27 = vpop.eup %2773 }
 0x128   :  { %v539_v30 = vadd.f32 1.0, %v2774_v27 }
 0x129   :  { %2775 = vrcp.f32 %v532_v22 }
 0x12a   :  { %2777 = vrcp.f32 %v539_v30 }
 0x133   :  { %v2776_v33 = vpop.eup %2775 }
 0x134   :  { %v549_v37 = vmul.f32 %v2776_v33, %v548_v31  ;;  %v2778_v42 = vpop.eup %2777 }
 0x135   :  { %v552_v47 = vsub.f32 1.0, %v2778_v42  ;;  %v554_v54 = vmul.f32 0.0, %v2778_v42 }
 0x136   :  { %v550_v38 = vadd.f32 %v549_v37, %v273_v36 }
 0x138   :  { %2779 = vtanh.f32 %v550_v38 }
 0x142   :  { %v2780_v49 = vpop.eup %2779 }
 0x143   :  { %v553_v52 = vmul.f32 %v2780_v49, %v552_v47 }
 0x145   :  { %v555_v58 = vadd.f32 %v554_v54, %v553_v52 }
 0x147   :  { %624 = vmatmul.mubr.f32.vlgmr.msra.gmra.mrb[2].mxu0 %v555_v58  ;;  %2012 = vmatmul.mubr.f32.vlgmr.msra.gmra.mrb[10].mxu1 %v555_v58 }
 0x148   :  { %2403 = vmatpush1.bf16.msra.mxu0 %v3055_v17  ;;  %2434 = vmatpush3.bf16.msra.mxu1 %v3124_v41 }
 0x149   :  { %2405 = vmatprep.subr.bf16.mxu0 %v3058_v18  ;;  %2435 = vmatprep.subr.bf16.mxu1 %v2852_v40 }
 0x14a   :  { %789 = vmatprep.mubr.f32.mxu0 %v2851_v3  ;;  %2046 = vmatprep.mubr.msk.f32.mxu1 %vm2853_vm0, %v2851_v3 }
 0x14c   :  { %2407 = vmatpush1.bf16.msra.mxu0 %v3078_v25  ;;  %2437 = vmatpush3.bf16.msra.mxu1 %v3155_v51 }
 0x14d   :  { %2409 = vmatprep.subr.bf16.mxu0 %v3081_v26  ;;  %2438 = vmatprep.subr.bf16.mxu1 %v2852_v40 }
 0x150   :  { %2411 = vmatpush1.bf16.msra.mxu0 %v3106_v34  ;;  %2440 = vmatpush3.bf16.msra.mxu1 %v3187_v61 }
 0x151   :  { %2413 = vmatprep.subr.bf16.mxu0 %v3109_v35  ;;  %2441 = vmatprep.subr.bf16.mxu1 %v2852_v40 }
 0x154   :  { %2415 = vmatpush1.bf16.msra.mxu0 %v3137_v45  ;;  %2443 = vmatpush3.bf16.msra.mxu1 %v3222_v10 }
 0x155   :  { %2417 = vmatprep.subr.bf16.mxu0 %v3140_v46  ;;  %2444 = vmatprep.subr.bf16.mxu1 %v2852_v40 }
 0x158   :  { %2419 = vmatpush1.bf16.msra.mxu0 %v3169_v55  ;;  %2446 = vmatpush3.bf16.msra.mxu1 %v3248_v20 }
 0x159   :  { %2421 = vmatprep.subr.bf16.mxu0 %v3172_v56  ;;  %2447 = vmatprep.subr.bf16.mxu1 %v2852_v40 }
 0x15c   :  { %2423 = vmatpush1.bf16.msra.mxu0 %v3201_v1  ;;  %2449 = vmatpush3.bf16.msra.mxu1 %v3265_v24 }
 0x15d   :  { %2425 = vmatprep.subr.bf16.mxu0 %v3207_v4  ;;  %2450 = vmatprep.subr.bf16.mxu1 %v2852_v40 }
 0x160   :  { %2427 = vmatpush1.bf16.msra.mxu0 %v3233_v13  ;;  %2452 = vmatpush3.bf16.msra.mxu1 %v3278_v29 }
 0x161   :  { %2429 = vmatprep.subr.bf16.mxu0 %v3239_v15  ;;  %2453 = vmatprep.subr.bf16.mxu1 %v2852_v40 }
 0x164   :  { %2431 = vmatpush1.bf16.msra.mxu0 %v3261_v23  ;;  %2455 = vmatpush3.bf16.msra.mxu1 %v3292_v32 }
 0x165   :  { %2457 = vmatprep.subr.bf16.mxu0 %v3035_v9  ;;  %2488 = vmatprep.subr.bf16.mxu1 %v2852_v40 }
 0x21a   :  { %v625_v39 = vpop.f32.mrb[2].mxu0  ;;  %v696_v44 = vpop.f32.mrb[10].mxu1 }
 0x21b   :  { %v2738_v60 = vadd.f32 %v625_v39, %v3347_v2  ;;  %v627_v63 = vpop.f32.mrb[3].mxu0  ;;  %v2013_v0 = vpop.f32.mrb[11].mxu1  ;;  %v714_v19 = vadd.f32 %v3356_v28, %v696_v44 }
 0x21c   :  { %v2739_v7 = vadd.f32 %v627_v63, %v3349_v6 }
 0x21d   :  { %v1726_v5 = vmul.f32 -1.442695, %v2738_v60 }
 0x21e   :  { %v1727_v8 = vmul.f32 -1.442695, %v2739_v7 }
 0x21f   :  { %2781 = vpow2.f32 %v1726_v5 }
 0x220   :  { %2783 = vpow2.f32 %v1727_v8 }
 0x229   :  { %v2782_v11 = vpop.eup %2781 }
 0x22a   :  { %v704_v12 = vadd.f32 1.0, %v2782_v11  ;;  %v2784_v14 = vpop.eup %2783 }
 0x22b   :  { %v711_v16 = vadd.f32 1.0, %v2784_v14 }
 0x22c   :  { %2785 = vrcp.f32 %v704_v12 }
 0x22d   :  { %2787 = vrcp.f32 %v711_v16 }
 0x236   :  { %v2786_v21 = vpop.eup %2785 }
 0x237   :  { %v715_v22 = vmul.f32 %v2786_v21, %v714_v19  ;;  %v2788_v30 = vpop.eup %2787 }
 0x238   :  { %v718_v31 = vsub.f32 1.0, %v2788_v30  ;;  %v720_v37 = vmul.f32 %v2788_v30, %v555_v58 }
 0x239   :  { %v716_v27 = vadd.f32 %v715_v22, %v3333_v43 }
 0x23b   :  { %2789 = vtanh.f32 %v716_v27 }
 0x245   :  { %v2790_v33 = vpop.eup %2789 }
 0x246   :  { %v719_v36 = vmul.f32 %v2790_v33, %v718_v31 }
 0x248   :  { %v721_v38 = vadd.f32 %v720_v37, %v719_v36 }
 0x24a   :  { %790 = vmatmul.mubr.f32.vlgmr.msra.gmra.mrb[4].mxu0 %v721_v38  ;;  %2047 = vmatmul.mubr.f32.vlgmr.msra.gmra.mrb[12].mxu1 %v721_v38 }
 0x24b   :  { %2459 = vmatpush1.bf16.msra.mxu0 %v3055_v17  ;;  %2490 = vmatpush3.bf16.msra.mxu1 %v3124_v41 }
 0x24c   :  { %2461 = vmatprep.subr.bf16.mxu0 %v3058_v18  ;;  %2491 = vmatprep.subr.bf16.mxu1 %v2852_v40 }
 0x24d   :  { %955 = vmatprep.mubr.f32.mxu0 %v2851_v3  ;;  %2081 = vmatprep.mubr.msk.f32.mxu1 %vm2853_vm0, %v2851_v3 }
 0x24f   :  { %2463 = vmatpush1.bf16.msra.mxu0 %v3078_v25  ;;  %2493 = vmatpush3.bf16.msra.mxu1 %v3155_v51 }
 0x250   :  { %2465 = vmatprep.subr.bf16.mxu0 %v3081_v26  ;;  %2494 = vmatprep.subr.bf16.mxu1 %v2852_v40 }
 0x253   :  { %2467 = vmatpush1.bf16.msra.mxu0 %v3106_v34  ;;  %2496 = vmatpush3.bf16.msra.mxu1 %v3187_v61 }
 0x254   :  { %2469 = vmatprep.subr.bf16.mxu0 %v3109_v35  ;;  %2497 = vmatprep.subr.bf16.mxu1 %v2852_v40 }
 0x257   :  { %2471 = vmatpush1.bf16.msra.mxu0 %v3137_v45  ;;  %2499 = vmatpush3.bf16.msra.mxu1 %v3222_v10 }
 0x258   :  { %2473 = vmatprep.subr.bf16.mxu0 %v3140_v46  ;;  %2500 = vmatprep.subr.bf16.mxu1 %v2852_v40 }
 0x25b   :  { %2475 = vmatpush1.bf16.msra.mxu0 %v3169_v55  ;;  %2502 = vmatpush3.bf16.msra.mxu1 %v3248_v20 }
 0x25c   :  { %2477 = vmatprep.subr.bf16.mxu0 %v3172_v56  ;;  %2503 = vmatprep.subr.bf16.mxu1 %v2852_v40 }
 0x25f   :  { %2479 = vmatpush1.bf16.msra.mxu0 %v3201_v1  ;;  %2505 = vmatpush3.bf16.msra.mxu1 %v3265_v24 }
 0x260   :  { %2481 = vmatprep.subr.bf16.mxu0 %v3207_v4  ;;  %2506 = vmatprep.subr.bf16.mxu1 %v2852_v40 }
 0x263   :  { %2483 = vmatpush1.bf16.msra.mxu0 %v3233_v13  ;;  %2508 = vmatpush3.bf16.msra.mxu1 %v3278_v29 }
 0x264   :  { %2485 = vmatprep.subr.bf16.mxu0 %v3239_v15  ;;  %2509 = vmatprep.subr.bf16.mxu1 %v2852_v40 }
 0x267   :  { %2487 = vmatpush1.bf16.msra.mxu0 %v3261_v23  ;;  %2511 = vmatpush3.bf16.msra.mxu1 %v3292_v32 }
 0x268   :  { %2513 = vmatprep.subr.bf16.mxu0 %v3035_v9  ;;  %2544 = vmatprep.subr.bf16.mxu1 %v2852_v40 }
 0x31d   :  { %v791_v43 = vpop.f32.mrb[4].mxu0  ;;  %v862_v42 = vpop.f32.mrb[12].mxu1 }
 0x31e   :  { %v2740_v47 = vadd.f32 %v791_v43, %v3347_v2  ;;  %v793_v49 = vpop.f32.mrb[5].mxu0  ;;  %v2048_v52 = vpop.f32.mrb[13].mxu1  ;;  %v880_v5 = vadd.f32 %v3356_v28, %v862_v42 }
 0x31f   :  { %v2741_v58 = vadd.f32 %v793_v49, %v3349_v6 }
 0x320   :  { %v1728_v54 = vmul.f32 -1.442695, %v2740_v47 }
 0x321   :  { %v1729_v39 = vmul.f32 -1.442695, %v2741_v58 }
 0x322   :  { %2791 = vpow2.f32 %v1728_v54 }
 0x323   :  { %2793 = vpow2.f32 %v1729_v39 }
 0x32c   :  { %v2792_v44 = vpop.eup %2791 }
 0x32d   :  { %v870_v60 = vadd.f32 1.0, %v2792_v44  ;;  %v2794_v63 = vpop.eup %2793 }
 0x32e   :  { %v877_v0 = vadd.f32 1.0, %v2794_v63 }
 0x32f   :  { %2795 = vrcp.f32 %v870_v60 }
 0x330   :  { %2797 = vrcp.f32 %v877_v0 }
 0x339   :  { %v2796_v7 = vpop.eup %2795 }
 0x33a   :  { %v881_v8 = vmul.f32 %v2796_v7, %v880_v5  ;;  %v2798_v12 = vpop.eup %2797 }
 0x33b   :  { %v884_v14 = vsub.f32 1.0, %v2798_v12  ;;  %v886_v21 = vmul.f32 %v2798_v12, %v721_v38 }
 0x33c   :  { %v882_v11 = vadd.f32 %v881_v8, %v3337_v50 }
 0x33e   :  { %2799 = vtanh.f32 %v882_v11 }
 0x348   :  { %v2800_v16 = vpop.eup %2799 }
 0x349   :  { %v885_v19 = vmul.f32 %v2800_v16, %v884_v14 }
 0x34b   :  { %v887_v22 = vadd.f32 %v886_v21, %v885_v19 }
 0x34d   :  { %956 = vmatmul.mubr.f32.vlgmr.msra.gmra.mrb[6].mxu0 %v887_v22  ;;  %2082 = vmatmul.mubr.f32.vlgmr.msra.gmra.mrb[14].mxu1 %v887_v22 }
 0x34e   :  { %2515 = vmatpush1.bf16.msra.mxu0 %v3055_v17  ;;  %2546 = vmatpush3.bf16.msra.mxu1 %v3124_v41 }
 0x34f   :  { %2517 = vmatprep.subr.bf16.mxu0 %v3058_v18  ;;  %2547 = vmatprep.subr.bf16.mxu1 %v2852_v40 }
 0x350   :  { %1121 = vmatprep.mubr.f32.mxu0 %v2851_v3  ;;  %2116 = vmatprep.mubr.msk.f32.mxu1 %vm2853_vm0, %v2851_v3 }
 0x352   :  { %2519 = vmatpush1.bf16.msra.mxu0 %v3078_v25  ;;  %2549 = vmatpush3.bf16.msra.mxu1 %v3155_v51 }
 0x353   :  { %2521 = vmatprep.subr.bf16.mxu0 %v3081_v26  ;;  %2550 = vmatprep.subr.bf16.mxu1 %v2852_v40 }
 0x356   :  { %2523 = vmatpush1.bf16.msra.mxu0 %v3106_v34  ;;  %2552 = vmatpush3.bf16.msra.mxu1 %v3187_v61 }
 0x357   :  { %2525 = vmatprep.subr.bf16.mxu0 %v3109_v35  ;;  %2553 = vmatprep.subr.bf16.mxu1 %v2852_v40 }
 0x35a   :  { %2527 = vmatpush1.bf16.msra.mxu0 %v3137_v45  ;;  %2555 = vmatpush3.bf16.msra.mxu1 %v3222_v10 }
 0x35b   :  { %2529 = vmatprep.subr.bf16.mxu0 %v3140_v46  ;;  %2556 = vmatprep.subr.bf16.mxu1 %v2852_v40 }
 0x35e   :  { %2531 = vmatpush1.bf16.msra.mxu0 %v3169_v55  ;;  %2558 = vmatpush3.bf16.msra.mxu1 %v3248_v20 }
 0x35f   :  { %2533 = vmatprep.subr.bf16.mxu0 %v3172_v56  ;;  %2559 = vmatprep.subr.bf16.mxu1 %v2852_v40 }
 0x362   :  { %2535 = vmatpush1.bf16.msra.mxu0 %v3201_v1  ;;  %2561 = vmatpush3.bf16.msra.mxu1 %v3265_v24 }
 0x363   :  { %2537 = vmatprep.subr.bf16.mxu0 %v3207_v4  ;;  %2562 = vmatprep.subr.bf16.mxu1 %v2852_v40 }
 0x366   :  { %2539 = vmatpush1.bf16.msra.mxu0 %v3233_v13  ;;  %2564 = vmatpush3.bf16.msra.mxu1 %v3278_v29 }
 0x367   :  { %2541 = vmatprep.subr.bf16.mxu0 %v3239_v15  ;;  %2565 = vmatprep.subr.bf16.mxu1 %v2852_v40 }
 0x36a   :  { %2543 = vmatpush1.bf16.msra.mxu0 %v3261_v23  ;;  %2567 = vmatpush3.bf16.msra.mxu1 %v3292_v32 }
 0x36b   :  { %2569 = vmatprep.subr.bf16.mxu0 %v3035_v9  ;;  %2600 = vmatprep.subr.bf16.mxu1 %v2852_v40 }
 0x420   :  { %v957_v50 = vpop.f32.mrb[6].mxu0  ;;  %v1028_v27 = vpop.f32.mrb[14].mxu1 }
 0x421   :  { %v2742_v30 = vadd.f32 %v957_v50, %v3347_v2  ;;  %v959_v31 = vpop.f32.mrb[7].mxu0  ;;  %v2083_v33 = vpop.f32.mrb[15].mxu1  ;;  %v1046_v52 = vadd.f32 %v3356_v28, %v1028_v27 }
 0x422   :  { %v2743_v37 = vadd.f32 %v959_v31, %v3349_v6 }
 0x423   :  { %v1730_v36 = vmul.f32 -1.442695, %v2742_v30 }
 0x424   :  { %v1731_v38 = vmul.f32 -1.442695, %v2743_v37 }
 0x425   :  { %2801 = vpow2.f32 %v1730_v36 }
 0x426   :  { %2803 = vpow2.f32 %v1731_v38 }
 0x42f   :  { %v2802_v43 = vpop.eup %2801 }
 0x430   :  { %v1036_v42 = vadd.f32 1.0, %v2802_v43  ;;  %v2804_v47 = vpop.eup %2803 }
 0x431   :  { %v1043_v49 = vadd.f32 1.0, %v2804_v47 }
 0x432   :  { %2805 = vrcp.f32 %v1036_v42 }
 0x433   :  { %2807 = vrcp.f32 %v1043_v49 }
 0x43c   :  { %v2806_v54 = vpop.eup %2805 }
 0x43d   :  { %v1047_v58 = vmul.f32 %v2806_v54, %v1046_v52  ;;  %v2808_v44 = vpop.eup %2807 }
 0x43e   :  { %v1050_v60 = vsub.f32 1.0, %v2808_v44  ;;  %v1052_v5 = vmul.f32 %v2808_v44, %v887_v22 }
 0x43f   :  { %v1048_v39 = vadd.f32 %v1047_v58, %v3335_v48 }
 0x441   :  { %2809 = vtanh.f32 %v1048_v39 }
 0x44b   :  { %v2810_v63 = vpop.eup %2809 }
 0x44c   :  { %v1051_v0 = vmul.f32 %v2810_v63, %v1050_v60 }
 0x44e   :  { %v1053_v7 = vadd.f32 %v1052_v5, %v1051_v0 }
 0x450   :  { %1122 = vmatmul.mubr.f32.vlgmr.msra.gmra.mrb[8].mxu0 %v1053_v7  ;;  %2117 = vmatmul.mubr.f32.vlgmr.msra.gmra.mrb[16].mxu1 %v1053_v7 }
 0x451   :  { %2571 = vmatpush1.bf16.msra.mxu0 %v3055_v17  ;;  %2602 = vmatpush3.bf16.msra.mxu1 %v3124_v41 }
 0x452   :  { %2573 = vmatprep.subr.bf16.mxu0 %v3058_v18  ;;  %2603 = vmatprep.subr.bf16.mxu1 %v2852_v40 }
 0x453   :  { %1287 = vmatprep.mubr.f32.mxu0 %v2851_v3  ;;  %2151 = vmatprep.mubr.msk.f32.mxu1 %vm2853_vm0, %v2851_v3 }
 0x455   :  { %2575 = vmatpush1.bf16.msra.mxu0 %v3078_v25  ;;  %2605 = vmatpush3.bf16.msra.mxu1 %v3155_v51 }
 0x456   :  { %2577 = vmatprep.subr.bf16.mxu0 %v3081_v26  ;;  %2606 = vmatprep.subr.bf16.mxu1 %v2852_v40 }
 0x459   :  { %2579 = vmatpush1.bf16.msra.mxu0 %v3106_v34  ;;  %2608 = vmatpush3.bf16.msra.mxu1 %v3187_v61 }
 0x45a   :  { %2581 = vmatprep.subr.bf16.mxu0 %v3109_v35  ;;  %2609 = vmatprep.subr.bf16.mxu1 %v2852_v40 }
 0x45d   :  { %2583 = vmatpush1.bf16.msra.mxu0 %v3137_v45  ;;  %2611 = vmatpush3.bf16.msra.mxu1 %v3222_v10 }
 0x45e   :  { %2585 = vmatprep.subr.bf16.mxu0 %v3140_v46  ;;  %2612 = vmatprep.subr.bf16.mxu1 %v2852_v40 }
 0x461   :  { %2587 = vmatpush1.bf16.msra.mxu0 %v3169_v55  ;;  %2614 = vmatpush3.bf16.msra.mxu1 %v3248_v20 }
 0x462   :  { %2589 = vmatprep.subr.bf16.mxu0 %v3172_v56  ;;  %2615 = vmatprep.subr.bf16.mxu1 %v2852_v40 }
 0x465   :  { %2591 = vmatpush1.bf16.msra.mxu0 %v3201_v1  ;;  %2617 = vmatpush3.bf16.msra.mxu1 %v3265_v24 }
 0x466   :  { %2593 = vmatprep.subr.bf16.mxu0 %v3207_v4  ;;  %2618 = vmatprep.subr.bf16.mxu1 %v2852_v40 }
 0x469   :  { %2595 = vmatpush1.bf16.msra.mxu0 %v3233_v13  ;;  %2620 = vmatpush3.bf16.msra.mxu1 %v3278_v29 }
 0x46a   :  { %2597 = vmatprep.subr.bf16.mxu0 %v3239_v15  ;;  %2621 = vmatprep.subr.bf16.mxu1 %v2852_v40 }
 0x46d   :  { %2599 = vmatpush1.bf16.msra.mxu0 %v3261_v23  ;;  %2623 = vmatpush3.bf16.msra.mxu1 %v3292_v32 }
 0x46e   :  { %2625 = vmatprep.subr.bf16.mxu0 %v3035_v9  ;;  %2656 = vmatprep.subr.bf16.mxu1 %v2852_v40 }
 0x523   :  { %v1123_v48 = vpop.f32.mrb[8].mxu0  ;;  %v1194_v8 = vpop.f32.mrb[16].mxu1 }
 0x524   :  { %v2744_v11 = vadd.f32 %v1123_v48, %v3347_v2  ;;  %v1125_v12 = vpop.f32.mrb[9].mxu0  ;;  %v2118_v14 = vpop.f32.mrb[17].mxu1  ;;  %v1212_v31 = vadd.f32 %v3356_v28, %v1194_v8 }
 0x525   :  { %v2745_v19 = vadd.f32 %v1125_v12, %v3349_v6 }
 0x526   :  { %v1732_v16 = vmul.f32 -1.442695, %v2744_v11 }
 0x527   :  { %v1733_v21 = vmul.f32 -1.442695, %v2745_v19 }
 0x528   :  { %2811 = vpow2.f32 %v1732_v16 }
 0x529   :  { %2813 = vpow2.f32 %v1733_v21 }
 0x532   :  { %v2812_v22 = vpop.eup %2811 }
 0x533   :  { %v1202_v50 = vadd.f32 1.0, %v2812_v22  ;;  %v2814_v27 = vpop.eup %2813 }
 0x534   :  { %v1209_v30 = vadd.f32 1.0, %v2814_v27 }
 0x535   :  { %2815 = vrcp.f32 %v1202_v50 }
 0x536   :  { %2817 = vrcp.f32 %v1209_v30 }
 0x53f   :  { %v2816_v33 = vpop.eup %2815 }
 0x540   :  { %v1213_v36 = vmul.f32 %v2816_v33, %v1212_v31  ;;  %v2818_v38 = vpop.eup %2817 }
 0x541   :  { %v1216_v43 = vsub.f32 1.0, %v2818_v38  ;;  %v1218_v49 = vmul.f32 %v2818_v38, %v1053_v7 }
 0x542   :  { %v1214_v37 = vadd.f32 %v1213_v36, %v3341_v57 }
 0x544   :  { %2819 = vtanh.f32 %v1214_v37 }
 0x54e   :  { %v2820_v42 = vpop.eup %2819 }
 0x54f   :  { %v1217_v47 = vmul.f32 %v2820_v42, %v1216_v43 }
 0x551   :  { %v1219_v52 = vadd.f32 %v1218_v49, %v1217_v47 }
 0x553   :  { %1288 = vmatmul.mubr.f32.vlgmr.msra.gmra.mrb[10].mxu0 %v1219_v52  ;;  %2152 = vmatmul.mubr.f32.vlgmr.msra.gmra.mrb[18].mxu1 %v1219_v52 }
 0x554   :  { %2627 = vmatpush1.bf16.msra.mxu0 %v3055_v17  ;;  %2658 = vmatpush3.bf16.msra.mxu1 %v3124_v41 }
 0x555   :  { %2629 = vmatprep.subr.bf16.mxu0 %v3058_v18  ;;  %2659 = vmatprep.subr.bf16.mxu1 %v2852_v40 }
 0x556   :  { %1453 = vmatprep.mubr.f32.mxu0 %v2851_v3  ;;  %2186 = vmatprep.mubr.msk.f32.mxu1 %vm2853_vm0, %v2851_v3 }
 0x558   :  { %2631 = vmatpush1.bf16.msra.mxu0 %v3078_v25  ;;  %2661 = vmatpush3.bf16.msra.mxu1 %v3155_v51 }
 0x559   :  { %2633 = vmatprep.subr.bf16.mxu0 %v3081_v26  ;;  %2662 = vmatprep.subr.bf16.mxu1 %v2852_v40 }
 0x55c   :  { %2635 = vmatpush1.bf16.msra.mxu0 %v3106_v34  ;;  %2664 = vmatpush3.bf16.msra.mxu1 %v3187_v61 }
 0x55d   :  { %2637 = vmatprep.subr.bf16.mxu0 %v3109_v35  ;;  %2665 = vmatprep.subr.bf16.mxu1 %v2852_v40 }
 0x560   :  { %2639 = vmatpush1.bf16.msra.mxu0 %v3137_v45  ;;  %2667 = vmatpush3.bf16.msra.mxu1 %v3222_v10 }
 0x561   :  { %2641 = vmatprep.subr.bf16.mxu0 %v3140_v46  ;;  %2668 = vmatprep.subr.bf16.mxu1 %v2852_v40 }
 0x564   :  { %2643 = vmatpush1.bf16.msra.mxu0 %v3169_v55  ;;  %2670 = vmatpush3.bf16.msra.mxu1 %v3248_v20 }
 0x565   :  { %2645 = vmatprep.subr.bf16.mxu0 %v3172_v56  ;;  %2671 = vmatprep.subr.bf16.mxu1 %v2852_v40 }
 0x568   :  { %2647 = vmatpush1.bf16.msra.mxu0 %v3201_v1  ;;  %2673 = vmatpush3.bf16.msra.mxu1 %v3265_v24 }
 0x569   :  { %2649 = vmatprep.subr.bf16.mxu0 %v3207_v4  ;;  %2674 = vmatprep.subr.bf16.mxu1 %v2852_v40 }
 0x56c   :  { %2651 = vmatpush1.bf16.msra.mxu0 %v3233_v13  ;;  %2676 = vmatpush3.bf16.msra.mxu1 %v3278_v29 }
 0x56d   :  { %2653 = vmatprep.subr.bf16.mxu0 %v3239_v15  ;;  %2677 = vmatprep.subr.bf16.mxu1 %v2852_v40 }
 0x570   :  { %2655 = vmatpush1.bf16.msra.mxu0 %v3261_v23  ;;  %2679 = vmatpush3.bf16.msra.mxu1 %v3292_v32 }
 0x571   :  { %2681 = vmatprep.subr.bf16.mxu0 %v3035_v9  ;;  %2712 = vmatprep.subr.bf16.mxu1 %v2852_v40 }
 0x626   :  { %v1289_v57 = vpop.f32.mrb[10].mxu0  ;;  %v1360_v54 = vpop.f32.mrb[18].mxu1 }
 0x627   :  { %v2746_v58 = vadd.f32 %v1289_v57, %v3347_v2  ;;  %v1291_v39 = vpop.f32.mrb[11].mxu0  ;;  %v2153_v44 = vpop.f32.mrb[19].mxu1  ;;  %v1378_v9 = vadd.f32 %v3356_v28, %v1360_v54 }
 0x628   :  { %v2747_v63 = vadd.f32 %v1291_v39, %v3349_v6 }
 0x629   :  { %v1734_v60 = vmul.f32 -1.442695, %v2746_v58 }
 0x62a   :  { %v1735_v0 = vmul.f32 -1.442695, %v2747_v63 }
 0x62b   :  { %2821 = vpow2.f32 %v1734_v60 }
 0x62c   :  { %2823 = vpow2.f32 %v1735_v0 }
 0x635   :  { %v2822_v5 = vpop.eup %2821 }
 0x636   :  { %v1368_v7 = vadd.f32 1.0, %v2822_v5  ;;  %v2824_v48 = vpop.eup %2823 }
 0x637   :  { %v1375_v8 = vadd.f32 1.0, %v2824_v48 }
 0x638   :  { %2825 = vrcp.f32 %v1368_v7 }
 0x639   :  { %2827 = vrcp.f32 %v1375_v8 }
 0x642   :  { %v2826_v11 = vpop.eup %2825 }
 0x643   :  { %v1379_v12 = vmul.f32 %v2826_v11, %v1378_v9  ;;  %v2828_v16 = vpop.eup %2827 }
 0x644   :  { %v1382_v19 = vsub.f32 1.0, %v2828_v16  ;;  %v1384_v50 = vmul.f32 %v2828_v16, %v1219_v52 }
 0x645   :  { %v1380_v14 = vadd.f32 %v1379_v12, %v3339_v53 }
 0x647   :  { %2829 = vtanh.f32 %v1380_v14 }
 0x651   :  { %v2830_v21 = vpop.eup %2829 }
 0x652   :  { %v1383_v22 = vmul.f32 %v2830_v21, %v1382_v19 }
 0x654   :  { %v1385_v27 = vadd.f32 %v1384_v50, %v1383_v22 }
 0x656   :  { %1454 = vmatmul.mubr.f32.vlgmr.msra.gmra.mrb[12].mxu0 %v1385_v27  ;;  %2187 = vmatmul.mubr.f32.vlgmr.msra.gmra.mrb[20].mxu1 %v1385_v27 }
 0x657   :  { %2683 = vmatpush1.bf16.msra.mxu0 %v3055_v17  ;;  %2714 = vmatpush3.bf16.msra.mxu1 %v3124_v41 }
 0x658   :  { %2685 = vmatprep.subr.bf16.mxu0 %v3058_v18  ;;  %2715 = vmatprep.subr.bf16.mxu1 %v2852_v40 }
 0x659   :  { %1619 = vmatprep.mubr.f32.mxu0 %v2851_v3  ;;  %2221 = vmatprep.mubr.msk.f32.mxu1 %vm2853_vm0, %v2851_v3 }
 0x65b   :  { %2687 = vmatpush1.bf16.msra.mxu0 %v3078_v25  ;;  %2717 = vmatpush3.bf16.msra.mxu1 %v3155_v51 }
 0x65c   :  { %2689 = vmatprep.subr.bf16.mxu0 %v3081_v26  ;;  %2718 = vmatprep.subr.bf16.mxu1 %v2852_v40 }
 0x65f   :  { %2691 = vmatpush1.bf16.msra.mxu0 %v3106_v34  ;;  %2720 = vmatpush3.bf16.msra.mxu1 %v3187_v61 }
 0x660   :  { %2693 = vmatprep.subr.bf16.mxu0 %v3109_v35  ;;  %2721 = vmatprep.subr.bf16.mxu1 %v2852_v40 }
 0x663   :  { %2695 = vmatpush1.bf16.msra.mxu0 %v3137_v45  ;;  %2723 = vmatpush3.bf16.msra.mxu1 %v3222_v10 }
 0x664   :  { %2697 = vmatprep.subr.bf16.mxu0 %v3140_v46  ;;  %2724 = vmatprep.subr.bf16.mxu1 %v2852_v40 }
 0x667   :  { %2699 = vmatpush1.bf16.msra.mxu0 %v3169_v55  ;;  %2726 = vmatpush3.bf16.msra.mxu1 %v3248_v20 }
 0x668   :  { %2701 = vmatprep.subr.bf16.mxu0 %v3172_v56  ;;  %2727 = vmatprep.subr.bf16.mxu1 %v2852_v40 }
 0x66b   :  { %2703 = vmatpush1.bf16.msra.mxu0 %v3201_v1  ;;  %2729 = vmatpush3.bf16.msra.mxu1 %v3265_v24 }
 0x66c   :  { %2705 = vmatprep.subr.bf16.mxu0 %v3207_v4  ;;  %2730 = vmatprep.subr.bf16.mxu1 %v2852_v40 }
 0x66f   :  { %2707 = vmatpush1.bf16.msra.mxu0 %v3233_v13  ;;  %2732 = vmatpush3.bf16.msra.mxu1 %v3278_v29 }
 0x670   :  { %2709 = vmatprep.subr.bf16.mxu0 %v3239_v15  ;;  %2733 = vmatprep.subr.bf16.mxu1 %v2852_v40 }
 0x673   :  { %2711 = vmatpush1.bf16.msra.mxu0 %v3261_v23  ;;  %2735 = vmatpush3.bf16.msra.mxu1 %v3292_v32 }
 0x729   :  { %v1455_v3 = vpop.f32.mrb[12].mxu0  ;;  %v1526_v17 = vpop.f32.mrb[20].mxu1 }
 0x72a   :  { %v2748_v18 = vadd.f32 %v1455_v3, %v3347_v2  ;;  %v1457_v25 = vpop.f32.mrb[13].mxu0  ;;  %v2188_v26 = vpop.f32.mrb[21].mxu1  ;;  %v1544_v55 = vadd.f32 %v3356_v28, %v1526_v17 }
 0x72b   :  { %v2749_v35 = vadd.f32 %v1457_v25, %v3349_v6 }
 0x72c   :  { %v1736_v34 = vmul.f32 -1.442695, %v2748_v18 }
 0x72d   :  { %v1737_v41 = vmul.f32 -1.442695, %v2749_v35 }
 0x72e   :  { %2831 = vpow2.f32 %v1736_v34 }
 0x72f   :  { %2833 = vpow2.f32 %v1737_v41 }
 0x738   :  { %v2832_v45 = vpop.eup %2831 }
 0x739   :  { %v1534_v46 = vadd.f32 1.0, %v2832_v45  ;;  %v2834_v40 = vpop.eup %2833 }
 0x73a   :  { %v1541_v51 = vadd.f32 1.0, %v2834_v40 }
 0x73b   :  { %2835 = vrcp.f32 %v1534_v46 }
 0x73c   :  { %2837 = vrcp.f32 %v1541_v51 }
 0x745   :  { %v2836_v56 = vpop.eup %2835 }
 0x746   :  { %v1545_v61 = vmul.f32 %v2836_v56, %v1544_v55  ;;  %v2838_v4 = vpop.eup %2837 }
 0x747   :  { %v1548_v10 = vsub.f32 1.0, %v2838_v4  ;;  %v1550_v20 = vmul.f32 %v2838_v4, %v1385_v27 }
 0x748   :  { %v1546_v1 = vadd.f32 %v1545_v61, %v3345_v62 }
 0x74a   :  { %2839 = vtanh.f32 %v1546_v1 }
 0x754   :  { %v2840_v13 = vpop.eup %2839 }
 0x755   :  { %v1549_v15 = vmul.f32 %v2840_v13, %v1548_v10 }
 0x757   :  { %v1551_v23 = vadd.f32 %v1550_v20, %v1549_v15 }
 0x759   :  { %1620 = vmatmul.mubr.f32.vlgmr.msra.gmra.mrb[14].mxu0 %v1551_v23  ;;  %2222 = vmatmul.mubr.f32.vlgmr.msra.gmra.mrb[22].mxu1 %v1551_v23 }
 0x82c   :  { %v1621_v24 = vpop.f32.mrb[14].mxu0  ;;  %v1692_v29 = vpop.f32.mrb[22].mxu1 }
 0x82d   :  { %v2750_v32 = vadd.f32 %v1621_v24, %v3347_v2  ;;  %v1623_v53 = vpop.f32.mrb[15].mxu0  ;;  %v2223_v30 = vpop.f32.mrb[23].mxu1  ;;  %v1710_v42 = vadd.f32 %v3356_v28, %v1692_v29 }
 0x82e   :  { %v2751_v33 = vadd.f32 %v1623_v53, %v3349_v6 }
 0x82f   :  { %v1738_v31 = vmul.f32 -1.442695, %v2750_v32 }
 0x830   :  { %v1739_v62 = vmul.f32 -1.442695, %v2751_v33 }
 0x831   :  { %2841 = vpow2.f32 %v1738_v31 }
 0x832   :  { %2843 = vpow2.f32 %v1739_v62 }
 0x83b   :  { %v2842_v36 = vpop.eup %2841 }
 0x83c   :  { %v1700_v37 = vadd.f32 1.0, %v2842_v36  ;;  %v2844_v38 = vpop.eup %2843 }
 0x83d   :  { %v1707_v43 = vadd.f32 1.0, %v2844_v38 }
 0x83e   :  { %2845 = vrcp.f32 %v1700_v37 }
 0x83f   :  { %2847 = vrcp.f32 %v1707_v43 }
 0x848   :  { %v2846_v47 = vpop.eup %2845 }
 0x849   :  { %v1711_v49 = vmul.f32 %v2846_v47, %v1710_v42  ;;  %v2848_v52 = vpop.eup %2847 }
 0x84a   :  { %v1714_v57 = vsub.f32 1.0, %v2848_v52  ;;  %v1716_v58 = vmul.f32 %v2848_v52, %v1551_v23 }
 0x84b   :  { %v1712_v2 = vadd.f32 %v1711_v49, %v3343_v59 }
 0x84d   :  { %2849 = vtanh.f32 %v1712_v2 }
 0x857   :  { %v2850_v54 = vpop.eup %2849 }
 0x858   :  { %v1715_v6 = vmul.f32 %v2850_v54, %v1714_v57 }
 0x85a   :  { %v1717_v39 = vadd.f32 %v1716_v58, %v1715_v6 }
 0x85c   :  { %1718 = vst [vmem:[%s3603_s5] sm:$0xff] %v1717_v39 }

</bundles_post_ra>
